<compile_context>
chip_gen: v7x
topology: tpu7x:2x2x1
jax: 0.10.0
libtpu: 0.0.40
codegen_flags: <defaults>
</compile_context>

<pallas_src>
import jax
import jax.numpy as jnp
from jax import lax
from jax.experimental import pallas as pl
from jax.experimental.pallas import tpu as pltpu

# ----------------------- small synthetic model config -----------------------
B, S, H = 2, 8, 32           # batch, sequence, hidden
BS = B * S                   # flattened (batch*seq) rows
NH = 2                       # attention heads
DH = H // NH                 # per-head dim
F = 64                       # FFN hidden width
L = 2                        # number of transformer blocks
V = 30                       # vocab size
MAXLEN = 16                  # positional-embedding length
POOL = 512                   # pooler ("hidden") width, matches nn.Linear(512, 2)
NCLS = 2
EPS = 1e-5                   # PyTorch LayerNorm default eps

# ------------------------- packed-slab lane offsets -------------------------
LANE = 128
# matrix slab (32 rows): per-layer segment of 512 lanes, then pooler weight
OFF_WQKV, OFF_WO, OFF_W1, OFF_W2T = 0, 128, 256, 384
W_LAYER = 512
OFF_WH = L * W_LAYER                     # 1024
W_TOTAL = OFF_WH + POOL                  # 1536
# vector slab (1 row): per-layer segment of 1024 lanes, then bh, bc
OFF_BQKV, OFF_BO, OFF_G1, OFF_BE1 = 0, 128, 256, 384
OFF_BF1, OFF_BF2, OFF_G2, OFF_BE2 = 512, 640, 768, 896
V_LAYER = 1024
OFF_BH = L * V_LAYER                     # 2048
OFF_BC = OFF_BH + POOL                   # 2560
V_TOTAL = OFF_BC + LANE                  # 2688


def _layer_norm(x, gamma, beta):
    mu = jnp.mean(x, axis=-1, keepdims=True)
    var = jnp.mean((x - mu) ** 2, axis=-1, keepdims=True)
    return (x - mu) * lax.rsqrt(var + EPS) * gamma + beta


# ----------------------------- fused kernel ---------------------------------
def fused_bert_kernel(x_ref, bias_ref, w_ref, wct_ref, vec_ref, out_ref):
    """All L encoder blocks + pooler + classifier head in one kernel.

    x_ref   : (BS, H)        f32 embeddings
    bias_ref: (BS, BS)       f32 additive attention bias (0 valid / -1e6 masked)
    w_ref   : (H, W_TOTAL)   packed matrix slab (wqkv|wo|w1|w2^T per layer, wh)
    wct_ref : (NCLS, POOL)   classifier weight, transposed
    vec_ref : (1, V_TOTAL)   packed biases / LayerNorm params / bh / bc
    """
    x = x_ref[...]                                        # (BS, H) f32
    abias = bias_ref[...]                                 # (BS, BS) f32

    for l in range(L):
        wb = l * W_LAYER
        vb = l * V_LAYER
        wqkv = w_ref[:, wb + OFF_WQKV: wb + OFF_WQKV + 3 * H]   # (H, 3H)
        wo = w_ref[:, wb + OFF_WO:   wb + OFF_WO + H]           # (H, H)
        w1 = w_ref[:, wb + OFF_W1:   wb + OFF_W1 + F]           # (H, F)
        w2t = w_ref[:, wb + OFF_W2T:  wb + OFF_W2T + F]         # (H, F) = w2^T
        bqkv = vec_ref[:, vb + OFF_BQKV: vb + OFF_BQKV + 3 * H]
        bo = vec_ref[:, vb + OFF_BO:   vb + OFF_BO + H]
        g1 = vec_ref[:, vb + OFF_G1:   vb + OFF_G1 + H]
        be1 = vec_ref[:, vb + OFF_BE1:  vb + OFF_BE1 + H]
        bf1 = vec_ref[:, vb + OFF_BF1:  vb + OFF_BF1 + F]
        bf2 = vec_ref[:, vb + OFF_BF2:  vb + OFF_BF2 + H]
        g2 = vec_ref[:, vb + OFF_G2:   vb + OFF_G2 + H]
        be2 = vec_ref[:, vb + OFF_BE2:  vb + OFF_BE2 + H]

        # fused QKV projection (1/sqrt(DH) already folded into the Q columns)
        qkv = jnp.dot(x, wqkv, preferred_element_type=jnp.float32) + bqkv
        q = qkv[:, 0:H]
        k = qkv[:, H:2 * H]
        v = qkv[:, 2 * H:3 * H]

        # multi-head attention; per-head contexts lane-concatenated, single Wo
        ctxs = []
        for h in range(NH):
            sl = slice(h * DH, (h + 1) * DH)
            sc = lax.dot_general(q[:, sl], k[:, sl], (((1,), (1,)), ((), ())),
                                 preferred_element_type=jnp.float32)  # (BS, BS)
            sc = sc + abias
            sc = sc - jnp.max(sc, axis=-1, keepdims=True)
            e = jnp.exp(sc)
            attn = e * pl.reciprocal(jnp.sum(e, axis=-1, keepdims=True),
                                     approx=True)
            ctxs.append(jnp.dot(attn, v[:, sl],
                                preferred_element_type=jnp.float32))  # (BS, DH)
        ctx = jnp.concatenate(ctxs, axis=-1)                          # (BS, H)
        mha = jnp.dot(ctx, wo, preferred_element_type=jnp.float32) + bo

        # AddNorm 1 (dropout is identity in eval)
        y1 = _layer_norm(x + mha, g1, be1)

        # position-wise FFN (ReLU); second matmul contracts against stored w2^T
        ff = jnp.dot(y1, w1, preferred_element_type=jnp.float32) + bf1
        ff = jnp.maximum(ff, 0.0)
        ff = lax.dot_general(ff, w2t, (((1,), (1,)), ((), ())),
                             preferred_element_type=jnp.float32) + bf2

        # AddNorm 2
        x = _layer_norm(y1 + ff, g2, be2)

    # encoded[:, 0, :] — static sublane slices of rows 0, S, 2S, ...
    cls = jnp.concatenate([x[b * S: b * S + 1, :] for b in range(B)], axis=0)

    # pooler: Tanh(Linear(H, 512)), then sigmoid(Linear(512, 2))
    wh = w_ref[:, OFF_WH: OFF_WH + POOL]                  # (H, POOL)
    bh = vec_ref[:, OFF_BH: OFF_BH + POOL]                # (1, POOL)
    bc = vec_ref[:, OFF_BC: OFF_BC + NCLS]                # (1, NCLS)
    hdn = jnp.tanh(jnp.dot(cls, wh, preferred_element_type=jnp.float32) + bh)
    logits = lax.dot_general(hdn, wct_ref[...], (((1,), (1,)), ((), ())),
                             preferred_element_type=jnp.float32) + bc
    out_ref[...] = jax.nn.sigmoid(logits)


def fused_forward(x2, attn_bias, w_slab, wct, vec_slab):
    vmem = pl.BlockSpec(memory_space=pltpu.MemorySpace.VMEM)
    return pl.pallas_call(
        fused_bert_kernel,
        out_shape=jax.ShapeDtypeStruct((B, NCLS), jnp.float32),
        in_specs=[vmem] * 5,
        out_specs=pl.BlockSpec(memory_space=pltpu.MemorySpace.VMEM),
    )(x2, attn_bias, w_slab, wct, vec_slab)


# ----------------------------- parameter setup -------------------------------
def _pack_lanes(pieces, rows, total):
    """pieces: list of (lane_offset, (rows, w) array) -> (rows, total) slab."""
    slab = jnp.zeros((rows, total), jnp.float32)
    for off, arr in pieces:
        slab = slab.at[:, off: off + arr.shape[1]].set(arr.astype(jnp.float32))
    return slab


def init_params(key):
    def nrm(k, shape, scale=0.02):
        return scale * jax.random.normal(k, shape, dtype=jnp.float32)

    keys = iter(jax.random.split(key, 64))
    inv_sqrt_dh = 1.0 / float(DH) ** 0.5

    w_pieces, v_pieces = [], []
    for l in range(L):
        wq = nrm(next(keys), (H, H))
        wk = nrm(next(keys), (H, H))
        wv = nrm(next(keys), (H, H))
        # fuse QKV and fold the attention 1/sqrt(DH) scale into the Q columns
        wqkv = jnp.concatenate([wq * inv_sqrt_dh, wk, wv], axis=1)   # (H, 3H)
        bqkv = jnp.zeros((1, 3 * H), jnp.float32)                    # bq scale folded (zero)
        wo = nrm(next(keys), (H, H))
        w1 = nrm(next(keys), (H, F))
        w2 = nrm(next(keys), (F, H))

        wb = l * W_LAYER
        w_pieces += [(wb + OFF_WQKV, wqkv), (wb + OFF_WO, wo),
                     (wb + OFF_W1, w1), (wb + OFF_W2T, w2.T)]
        vb = l * V_LAYER
        v_pieces += [
            (vb + OFF_BQKV, bqkv),
            (vb + OFF_BO, jnp.zeros((1, H), jnp.float32)),
            (vb + OFF_G1, jnp.ones((1, H), jnp.float32)),
            (vb + OFF_BE1, jnp.zeros((1, H), jnp.float32)),
            (vb + OFF_BF1, jnp.zeros((1, F), jnp.float32)),
            (vb + OFF_BF2, jnp.zeros((1, H), jnp.float32)),
            (vb + OFF_G2, jnp.ones((1, H), jnp.float32)),
            (vb + OFF_BE2, jnp.zeros((1, H), jnp.float32)),
        ]

    wh = nrm(next(keys), (H, POOL))
    wc = nrm(next(keys), (POOL, NCLS))
    w_pieces.append((OFF_WH, wh))
    v_pieces += [(OFF_BH, jnp.zeros((1, POOL), jnp.float32)),
                 (OFF_BC, jnp.zeros((1, NCLS), jnp.float32))]

    return {
        "tok_emb": nrm(next(keys), (V, H)),
        "seg_emb": nrm(next(keys), (2, H)),
        "pos_emb": nrm(next(keys), (1, MAXLEN, H)),
        "w_slab": _pack_lanes(w_pieces, H, W_TOTAL),        # (32, 1536)
        "vec_slab": _pack_lanes(v_pieces, 1, V_TOTAL),      # (1, 2688)
        "wct": wc.T,                                        # (NCLS, POOL)
    }


# ------------------------------ full forward ---------------------------------
@jax.jit
def bert_classifier_forward(params, tokens, segments, valid_len):
    # embeddings (pure gather/add glue — kept in plain JAX)
    x = (params["tok_emb"][tokens]
         + params["seg_emb"][segments]
         + params["pos_emb"][:, :S, :]).astype(jnp.float32)        # (B, S, H)
    x2 = x.reshape(BS, H)

    # additive attention bias: row i may attend key j iff
    # b(i)*S <= j < b(i)*S + valid_len[b(i)]  (block-diagonal + valid_len mask)
    batch_ids = jnp.repeat(jnp.arange(B, dtype=jnp.int32), S)       # (BS,)
    lo = (batch_ids * S)[:, None]                                   # (BS, 1)
    hi = lo + jnp.repeat(valid_len.astype(jnp.int32), S)[:, None]   # (BS, 1)
    col = jnp.arange(BS, dtype=jnp.int32)[None, :]                  # (1, BS)
    attn_bias = jnp.where((col >= lo) & (col < hi),
                          jnp.float32(0.0), jnp.float32(-1e6))      # (BS, BS)

    return fused_forward(x2, attn_bias, params["w_slab"],
                         params["wct"], params["vec_slab"])          # (B, 2)


if __name__ == "__main__":
    key = jax.random.PRNGKey(0)
    kp, kt = jax.random.split(key, 2)

    params = init_params(kp)
    tokens = jax.random.randint(kt, (B, S), 0, V, dtype=jnp.int32)
    segments = jnp.concatenate(
        [jnp.zeros((B, S // 2), jnp.int32), jnp.ones((B, S // 2), jnp.int32)],
        axis=1)
    valid_len = jnp.array([S, 5], dtype=jnp.int32)

    out = bert_classifier_forward(params, tokens, segments, valid_len)
    out = jax.block_until_ready(out)
    assert out.shape == (B, NCLS)
    print("KERNEL_OK")
</pallas_src>

<mosaic_0001>
module attributes {stable_mosaic.version = 11 : i64} {
  func.func @fused_bert_kernel(%arg0: memref<16x32xf32, #tpu.memory_space<vmem>>, %arg1: memref<16x16xf32, #tpu.memory_space<vmem>>, %arg2: memref<32x1536xf32, #tpu.memory_space<vmem>>, %arg3: memref<2x512xf32, #tpu.memory_space<vmem>>, %arg4: memref<1x2688xf32, #tpu.memory_space<vmem>>, %arg5: memref<2x2xf32, #tpu.memory_space<vmem>>) attributes {dimension_semantics = [], scalar_prefetch = 0 : i64, scratch_operands = 0 : i64, tpu.core_type = #tpu.core_type<tc>} {
    %c0 = arith.constant 0 : index
    %c0_0 = arith.constant 0 : index
    %0 = vector.load %arg0[%c0, %c0_0] : memref<16x32xf32, #tpu.memory_space<vmem>>, vector<16x32xf32>
    %c0_1 = arith.constant 0 : index
    %c0_2 = arith.constant 0 : index
    %1 = vector.load %arg1[%c0_1, %c0_2] : memref<16x16xf32, #tpu.memory_space<vmem>>, vector<16x16xf32>
    %c0_3 = arith.constant 0 : index
    %c0_4 = arith.constant 0 : index
    %2 = vector.load %arg2[%c0_3, %c0_4] : memref<32x1536xf32, #tpu.memory_space<vmem>>, vector<32x96xf32>
    %c0_5 = arith.constant 0 : index
    %c128 = arith.constant 128 : index
    %3 = vector.load %arg2[%c0_5, %c128] : memref<32x1536xf32, #tpu.memory_space<vmem>>, vector<32x32xf32>
    %c0_6 = arith.constant 0 : index
    %c256 = arith.constant 256 : index
    %4 = vector.load %arg2[%c0_6, %c256] : memref<32x1536xf32, #tpu.memory_space<vmem>>, vector<32x64xf32>
    %c0_7 = arith.constant 0 : index
    %c384 = arith.constant 384 : index
    %5 = vector.load %arg2[%c0_7, %c384] : memref<32x1536xf32, #tpu.memory_space<vmem>>, vector<32x64xf32>
    %c0_8 = arith.constant 0 : index
    %c0_9 = arith.constant 0 : index
    %6 = vector.load %arg4[%c0_8, %c0_9] : memref<1x2688xf32, #tpu.memory_space<vmem>>, vector<1x96xf32>
    %c0_10 = arith.constant 0 : index
    %c128_11 = arith.constant 128 : index
    %7 = vector.load %arg4[%c0_10, %c128_11] : memref<1x2688xf32, #tpu.memory_space<vmem>>, vector<1x32xf32>
    %c0_12 = arith.constant 0 : index
    %c256_13 = arith.constant 256 : index
    %8 = vector.load %arg4[%c0_12, %c256_13] : memref<1x2688xf32, #tpu.memory_space<vmem>>, vector<1x32xf32>
    %c0_14 = arith.constant 0 : index
    %c384_15 = arith.constant 384 : index
    %9 = vector.load %arg4[%c0_14, %c384_15] : memref<1x2688xf32, #tpu.memory_space<vmem>>, vector<1x32xf32>
    %c0_16 = arith.constant 0 : index
    %c512 = arith.constant 512 : index
    %10 = vector.load %arg4[%c0_16, %c512] : memref<1x2688xf32, #tpu.memory_space<vmem>>, vector<1x64xf32>
    %c0_17 = arith.constant 0 : index
    %c640 = arith.constant 640 : index
    %11 = vector.load %arg4[%c0_17, %c640] : memref<1x2688xf32, #tpu.memory_space<vmem>>, vector<1x32xf32>
    %c0_18 = arith.constant 0 : index
    %c768 = arith.constant 768 : index
    %12 = vector.load %arg4[%c0_18, %c768] : memref<1x2688xf32, #tpu.memory_space<vmem>>, vector<1x32xf32>
    %c0_19 = arith.constant 0 : index
    %c896 = arith.constant 896 : index
    %13 = vector.load %arg4[%c0_19, %c896] : memref<1x2688xf32, #tpu.memory_space<vmem>>, vector<1x32xf32>
    %cst = arith.constant dense<0.000000e+00> : vector<16x96xf32>
    %14 = tpu.matmul %0, %2, %cst {dimension_numbers = #tpu.dot_dimension_numbers<[1], [0], [0], [1], [0, 0, 1, 1], [], []>} : vector<16x32xf32>, vector<32x96xf32>, vector<16x96xf32> -> vector<16x96xf32>
    %15 = vector.broadcast %6 : vector<1x96xf32> to vector<16x96xf32>
    %16 = arith.addf %14, %15 : vector<16x96xf32>
    %17 = vector.extract_strided_slice %16 {offsets = [0, 0], sizes = [16, 32], strides = [1, 1]} : vector<16x96xf32> to vector<16x32xf32>
    %18 = vector.extract_strided_slice %16 {offsets = [0, 32], sizes = [16, 32], strides = [1, 1]} : vector<16x96xf32> to vector<16x32xf32>
    %19 = vector.extract_strided_slice %16 {offsets = [0, 64], sizes = [16, 32], strides = [1, 1]} : vector<16x96xf32> to vector<16x32xf32>
    %20 = vector.extract_strided_slice %17 {offsets = [0, 0], sizes = [16, 16], strides = [1, 1]} : vector<16x32xf32> to vector<16x16xf32>
    %21 = vector.extract_strided_slice %18 {offsets = [0, 0], sizes = [16, 16], strides = [1, 1]} : vector<16x32xf32> to vector<16x16xf32>
    %cst_20 = arith.constant dense<0.000000e+00> : vector<16x16xf32>
    %22 = tpu.matmul %20, %21, %cst_20 {dimension_numbers = #tpu.dot_dimension_numbers<[1], [1], [0], [0], [0, 0, 1, 0], [], []>} : vector<16x16xf32>, vector<16x16xf32>, vector<16x16xf32> -> vector<16x16xf32>
    %23 = arith.addf %22, %1 : vector<16x16xf32>
    %cst_21 = arith.constant dense<0xFF800000> : vector<16xf32>
    %24 = vector.multi_reduction <maximumf>, %23, %cst_21 [1] : vector<16x16xf32> to vector<16xf32>
    %25 = vector.shape_cast %24 : vector<16xf32> to vector<16x1xf32>
    %26 = vector.broadcast %25 : vector<16x1xf32> to vector<16x16xf32>
    %27 = arith.subf %23, %26 : vector<16x16xf32>
    %28 = math.exp %27 : vector<16x16xf32>
    %cst_22 = arith.constant dense<0.000000e+00> : vector<16xf32>
    %29 = vector.multi_reduction <add>, %28, %cst_22 [1] : vector<16x16xf32> to vector<16xf32>
    %30 = vector.shape_cast %29 : vector<16xf32> to vector<16x1xf32>
    %31 = tpu.reciprocal %30 {approx = true} : vector<16x1xf32> -> vector<16x1xf32>
    %32 = vector.broadcast %31 : vector<16x1xf32> to vector<16x16xf32>
    %33 = arith.mulf %28, %32 : vector<16x16xf32>
    %34 = vector.extract_strided_slice %19 {offsets = [0, 0], sizes = [16, 16], strides = [1, 1]} : vector<16x32xf32> to vector<16x16xf32>
    %cst_23 = arith.constant dense<0.000000e+00> : vector<16x16xf32>
    %35 = tpu.matmul %33, %34, %cst_23 {dimension_numbers = #tpu.dot_dimension_numbers<[1], [0], [0], [1], [0, 0, 1, 1], [], []>} : vector<16x16xf32>, vector<16x16xf32>, vector<16x16xf32> -> vector<16x16xf32>
    %36 = vector.extract_strided_slice %17 {offsets = [0, 16], sizes = [16, 16], strides = [1, 1]} : vector<16x32xf32> to vector<16x16xf32>
    %37 = vector.extract_strided_slice %18 {offsets = [0, 16], sizes = [16, 16], strides = [1, 1]} : vector<16x32xf32> to vector<16x16xf32>
    %cst_24 = arith.constant dense<0.000000e+00> : vector<16x16xf32>
    %38 = tpu.matmul %36, %37, %cst_24 {dimension_numbers = #tpu.dot_dimension_numbers<[1], [1], [0], [0], [0, 0, 1, 0], [], []>} : vector<16x16xf32>, vector<16x16xf32>, vector<16x16xf32> -> vector<16x16xf32>
    %39 = arith.addf %38, %1 : vector<16x16xf32>
    %cst_25 = arith.constant dense<0xFF800000> : vector<16xf32>
    %40 = vector.multi_reduction <maximumf>, %39, %cst_25 [1] : vector<16x16xf32> to vector<16xf32>
    %41 = vector.shape_cast %40 : vector<16xf32> to vector<16x1xf32>
    %42 = vector.broadcast %41 : vector<16x1xf32> to vector<16x16xf32>
    %43 = arith.subf %39, %42 : vector<16x16xf32>
    %44 = math.exp %43 : vector<16x16xf32>
    %cst_26 = arith.constant dense<0.000000e+00> : vector<16xf32>
    %45 = vector.multi_reduction <add>, %44, %cst_26 [1] : vector<16x16xf32> to vector<16xf32>
    %46 = vector.shape_cast %45 : vector<16xf32> to vector<16x1xf32>
    %47 = tpu.reciprocal %46 {approx = true} : vector<16x1xf32> -> vector<16x1xf32>
    %48 = vector.broadcast %47 : vector<16x1xf32> to vector<16x16xf32>
    %49 = arith.mulf %44, %48 : vector<16x16xf32>
    %50 = vector.extract_strided_slice %19 {offsets = [0, 16], sizes = [16, 16], strides = [1, 1]} : vector<16x32xf32> to vector<16x16xf32>
    %cst_27 = arith.constant dense<0.000000e+00> : vector<16x16xf32>
    %51 = tpu.matmul %49, %50, %cst_27 {dimension_numbers = #tpu.dot_dimension_numbers<[1], [0], [0], [1], [0, 0, 1, 1], [], []>} : vector<16x16xf32>, vector<16x16xf32>, vector<16x16xf32> -> vector<16x16xf32>
    %52 = tpu.concatenate %35, %51 in 1 : vector<16x16xf32>, vector<16x16xf32> -> vector<16x32xf32>
    %cst_28 = arith.constant dense<0.000000e+00> : vector<16x32xf32>
    %53 = tpu.matmul %52, %3, %cst_28 {dimension_numbers = #tpu.dot_dimension_numbers<[1], [0], [0], [1], [0, 0, 1, 1], [], []>} : vector<16x32xf32>, vector<32x32xf32>, vector<16x32xf32> -> vector<16x32xf32>
    %54 = vector.broadcast %7 : vector<1x32xf32> to vector<16x32xf32>
    %55 = arith.addf %53, %54 : vector<16x32xf32>
    %56 = arith.addf %0, %55 : vector<16x32xf32>
    %cst_29 = arith.constant dense<0.000000e+00> : vector<16xf32>
    %57 = vector.multi_reduction <add>, %56, %cst_29 [1] : vector<16x32xf32> to vector<16xf32>
    %58 = vector.shape_cast %57 : vector<16xf32> to vector<16x1xf32>
    %cst_30 = arith.constant 3.200000e+01 : f32
    %59 = vector.broadcast %cst_30 : f32 to vector<16x1xf32>
    %60 = arith.divf %58, %59 : vector<16x1xf32>
    %61 = vector.broadcast %60 : vector<16x1xf32> to vector<16x32xf32>
    %62 = arith.subf %56, %61 : vector<16x32xf32>
    %63 = arith.mulf %62, %62 : vector<16x32xf32>
    %cst_31 = arith.constant dense<0.000000e+00> : vector<16xf32>
    %64 = vector.multi_reduction <add>, %63, %cst_31 [1] : vector<16x32xf32> to vector<16xf32>
    %65 = vector.shape_cast %64 : vector<16xf32> to vector<16x1xf32>
    %cst_32 = arith.constant 3.200000e+01 : f32
    %66 = vector.broadcast %cst_32 : f32 to vector<16x1xf32>
    %67 = arith.divf %65, %66 : vector<16x1xf32>
    %68 = vector.broadcast %60 : vector<16x1xf32> to vector<16x32xf32>
    %69 = arith.subf %56, %68 : vector<16x32xf32>
    %cst_33 = arith.constant 9.99999974E-6 : f32
    %70 = vector.broadcast %cst_33 : f32 to vector<16x1xf32>
    %71 = arith.addf %67, %70 : vector<16x1xf32>
    %72 = math.rsqrt %71 : vector<16x1xf32>
    %73 = vector.broadcast %72 : vector<16x1xf32> to vector<16x32xf32>
    %74 = arith.mulf %69, %73 : vector<16x32xf32>
    %75 = vector.broadcast %8 : vector<1x32xf32> to vector<16x32xf32>
    %76 = arith.mulf %74, %75 : vector<16x32xf32>
    %77 = vector.broadcast %9 : vector<1x32xf32> to vector<16x32xf32>
    %78 = arith.addf %76, %77 : vector<16x32xf32>
    %cst_34 = arith.constant dense<0.000000e+00> : vector<16x64xf32>
    %79 = tpu.matmul %78, %4, %cst_34 {dimension_numbers = #tpu.dot_dimension_numbers<[1], [0], [0], [1], [0, 0, 1, 1], [], []>} : vector<16x32xf32>, vector<32x64xf32>, vector<16x64xf32> -> vector<16x64xf32>
    %80 = vector.broadcast %10 : vector<1x64xf32> to vector<16x64xf32>
    %81 = arith.addf %79, %80 : vector<16x64xf32>
    %cst_35 = arith.constant 0.000000e+00 : f32
    %82 = vector.broadcast %cst_35 : f32 to vector<16x64xf32>
    %83 = arith.maximumf %81, %82 : vector<16x64xf32>
    %cst_36 = arith.constant dense<0.000000e+00> : vector<16x32xf32>
    %84 = tpu.matmul %83, %5, %cst_36 {dimension_numbers = #tpu.dot_dimension_numbers<[1], [1], [0], [0], [0, 0, 1, 0], [], []>} : vector<16x64xf32>, vector<32x64xf32>, vector<16x32xf32> -> vector<16x32xf32>
    %85 = vector.broadcast %11 : vector<1x32xf32> to vector<16x32xf32>
    %86 = arith.addf %84, %85 : vector<16x32xf32>
    %87 = arith.addf %78, %86 : vector<16x32xf32>
    %cst_37 = arith.constant dense<0.000000e+00> : vector<16xf32>
    %88 = vector.multi_reduction <add>, %87, %cst_37 [1] : vector<16x32xf32> to vector<16xf32>
    %89 = vector.shape_cast %88 : vector<16xf32> to vector<16x1xf32>
    %cst_38 = arith.constant 3.200000e+01 : f32
    %90 = vector.broadcast %cst_38 : f32 to vector<16x1xf32>
    %91 = arith.divf %89, %90 : vector<16x1xf32>
    %92 = vector.broadcast %91 : vector<16x1xf32> to vector<16x32xf32>
    %93 = arith.subf %87, %92 : vector<16x32xf32>
    %94 = arith.mulf %93, %93 : vector<16x32xf32>
    %cst_39 = arith.constant dense<0.000000e+00> : vector<16xf32>
    %95 = vector.multi_reduction <add>, %94, %cst_39 [1] : vector<16x32xf32> to vector<16xf32>
    %96 = vector.shape_cast %95 : vector<16xf32> to vector<16x1xf32>
    %cst_40 = arith.constant 3.200000e+01 : f32
    %97 = vector.broadcast %cst_40 : f32 to vector<16x1xf32>
    %98 = arith.divf %96, %97 : vector<16x1xf32>
    %99 = vector.broadcast %91 : vector<16x1xf32> to vector<16x32xf32>
    %100 = arith.subf %87, %99 : vector<16x32xf32>
    %cst_41 = arith.constant 9.99999974E-6 : f32
    %101 = vector.broadcast %cst_41 : f32 to vector<16x1xf32>
    %102 = arith.addf %98, %101 : vector<16x1xf32>
    %103 = math.rsqrt %102 : vector<16x1xf32>
    %104 = vector.broadcast %103 : vector<16x1xf32> to vector<16x32xf32>
    %105 = arith.mulf %100, %104 : vector<16x32xf32>
    %106 = vector.broadcast %12 : vector<1x32xf32> to vector<16x32xf32>
    %107 = arith.mulf %105, %106 : vector<16x32xf32>
    %108 = vector.broadcast %13 : vector<1x32xf32> to vector<16x32xf32>
    %109 = arith.addf %107, %108 : vector<16x32xf32>
    %c0_42 = arith.constant 0 : index
    %c512_43 = arith.constant 512 : index
    %110 = vector.load %arg2[%c0_42, %c512_43] : memref<32x1536xf32, #tpu.memory_space<vmem>>, vector<32x96xf32>
    %c0_44 = arith.constant 0 : index
    %c640_45 = arith.constant 640 : index
    %111 = vector.load %arg2[%c0_44, %c640_45] : memref<32x1536xf32, #tpu.memory_space<vmem>>, vector<32x32xf32>
    %c0_46 = arith.constant 0 : index
    %c768_47 = arith.constant 768 : index
    %112 = vector.load %arg2[%c0_46, %c768_47] : memref<32x1536xf32, #tpu.memory_space<vmem>>, vector<32x64xf32>
    %c0_48 = arith.constant 0 : index
    %c896_49 = arith.constant 896 : index
    %113 = vector.load %arg2[%c0_48, %c896_49] : memref<32x1536xf32, #tpu.memory_space<vmem>>, vector<32x64xf32>
    %c0_50 = arith.constant 0 : index
    %c1024 = arith.constant 1024 : index
    %114 = vector.load %arg4[%c0_50, %c1024] : memref<1x2688xf32, #tpu.memory_space<vmem>>, vector<1x96xf32>
    %c0_51 = arith.constant 0 : index
    %c1152 = arith.constant 1152 : index
    %115 = vector.load %arg4[%c0_51, %c1152] : memref<1x2688xf32, #tpu.memory_space<vmem>>, vector<1x32xf32>
    %c0_52 = arith.constant 0 : index
    %c1280 = arith.constant 1280 : index
    %116 = vector.load %arg4[%c0_52, %c1280] : memref<1x2688xf32, #tpu.memory_space<vmem>>, vector<1x32xf32>
    %c0_53 = arith.constant 0 : index
    %c1408 = arith.constant 1408 : index
    %117 = vector.load %arg4[%c0_53, %c1408] : memref<1x2688xf32, #tpu.memory_space<vmem>>, vector<1x32xf32>
    %c0_54 = arith.constant 0 : index
    %c1536 = arith.constant 1536 : index
    %118 = vector.load %arg4[%c0_54, %c1536] : memref<1x2688xf32, #tpu.memory_space<vmem>>, vector<1x64xf32>
    %c0_55 = arith.constant 0 : index
    %c1664 = arith.constant 1664 : index
    %119 = vector.load %arg4[%c0_55, %c1664] : memref<1x2688xf32, #tpu.memory_space<vmem>>, vector<1x32xf32>
    %c0_56 = arith.constant 0 : index
    %c1792 = arith.constant 1792 : index
    %120 = vector.load %arg4[%c0_56, %c1792] : memref<1x2688xf32, #tpu.memory_space<vmem>>, vector<1x32xf32>
    %c0_57 = arith.constant 0 : index
    %c1920 = arith.constant 1920 : index
    %121 = vector.load %arg4[%c0_57, %c1920] : memref<1x2688xf32, #tpu.memory_space<vmem>>, vector<1x32xf32>
    %cst_58 = arith.constant dense<0.000000e+00> : vector<16x96xf32>
    %122 = tpu.matmul %109, %110, %cst_58 {dimension_numbers = #tpu.dot_dimension_numbers<[1], [0], [0], [1], [0, 0, 1, 1], [], []>} : vector<16x32xf32>, vector<32x96xf32>, vector<16x96xf32> -> vector<16x96xf32>
    %123 = vector.broadcast %114 : vector<1x96xf32> to vector<16x96xf32>
    %124 = arith.addf %122, %123 : vector<16x96xf32>
    %125 = vector.extract_strided_slice %124 {offsets = [0, 0], sizes = [16, 32], strides = [1, 1]} : vector<16x96xf32> to vector<16x32xf32>
    %126 = vector.extract_strided_slice %124 {offsets = [0, 32], sizes = [16, 32], strides = [1, 1]} : vector<16x96xf32> to vector<16x32xf32>
    %127 = vector.extract_strided_slice %124 {offsets = [0, 64], sizes = [16, 32], strides = [1, 1]} : vector<16x96xf32> to vector<16x32xf32>
    %128 = vector.extract_strided_slice %125 {offsets = [0, 0], sizes = [16, 16], strides = [1, 1]} : vector<16x32xf32> to vector<16x16xf32>
    %129 = vector.extract_strided_slice %126 {offsets = [0, 0], sizes = [16, 16], strides = [1, 1]} : vector<16x32xf32> to vector<16x16xf32>
    %cst_59 = arith.constant dense<0.000000e+00> : vector<16x16xf32>
    %130 = tpu.matmul %128, %129, %cst_59 {dimension_numbers = #tpu.dot_dimension_numbers<[1], [1], [0], [0], [0, 0, 1, 0], [], []>} : vector<16x16xf32>, vector<16x16xf32>, vector<16x16xf32> -> vector<16x16xf32>
    %131 = arith.addf %130, %1 : vector<16x16xf32>
    %cst_60 = arith.constant dense<0xFF800000> : vector<16xf32>
    %132 = vector.multi_reduction <maximumf>, %131, %cst_60 [1] : vector<16x16xf32> to vector<16xf32>
    %133 = vector.shape_cast %132 : vector<16xf32> to vector<16x1xf32>
    %134 = vector.broadcast %133 : vector<16x1xf32> to vector<16x16xf32>
    %135 = arith.subf %131, %134 : vector<16x16xf32>
    %136 = math.exp %135 : vector<16x16xf32>
    %cst_61 = arith.constant dense<0.000000e+00> : vector<16xf32>
    %137 = vector.multi_reduction <add>, %136, %cst_61 [1] : vector<16x16xf32> to vector<16xf32>
    %138 = vector.shape_cast %137 : vector<16xf32> to vector<16x1xf32>
    %139 = tpu.reciprocal %138 {approx = true} : vector<16x1xf32> -> vector<16x1xf32>
    %140 = vector.broadcast %139 : vector<16x1xf32> to vector<16x16xf32>
    %141 = arith.mulf %136, %140 : vector<16x16xf32>
    %142 = vector.extract_strided_slice %127 {offsets = [0, 0], sizes = [16, 16], strides = [1, 1]} : vector<16x32xf32> to vector<16x16xf32>
    %cst_62 = arith.constant dense<0.000000e+00> : vector<16x16xf32>
    %143 = tpu.matmul %141, %142, %cst_62 {dimension_numbers = #tpu.dot_dimension_numbers<[1], [0], [0], [1], [0, 0, 1, 1], [], []>} : vector<16x16xf32>, vector<16x16xf32>, vector<16x16xf32> -> vector<16x16xf32>
    %144 = vector.extract_strided_slice %125 {offsets = [0, 16], sizes = [16, 16], strides = [1, 1]} : vector<16x32xf32> to vector<16x16xf32>
    %145 = vector.extract_strided_slice %126 {offsets = [0, 16], sizes = [16, 16], strides = [1, 1]} : vector<16x32xf32> to vector<16x16xf32>
    %cst_63 = arith.constant dense<0.000000e+00> : vector<16x16xf32>
    %146 = tpu.matmul %144, %145, %cst_63 {dimension_numbers = #tpu.dot_dimension_numbers<[1], [1], [0], [0], [0, 0, 1, 0], [], []>} : vector<16x16xf32>, vector<16x16xf32>, vector<16x16xf32> -> vector<16x16xf32>
    %147 = arith.addf %146, %1 : vector<16x16xf32>
    %cst_64 = arith.constant dense<0xFF800000> : vector<16xf32>
    %148 = vector.multi_reduction <maximumf>, %147, %cst_64 [1] : vector<16x16xf32> to vector<16xf32>
    %149 = vector.shape_cast %148 : vector<16xf32> to vector<16x1xf32>
    %150 = vector.broadcast %149 : vector<16x1xf32> to vector<16x16xf32>
    %151 = arith.subf %147, %150 : vector<16x16xf32>
    %152 = math.exp %151 : vector<16x16xf32>
    %cst_65 = arith.constant dense<0.000000e+00> : vector<16xf32>
    %153 = vector.multi_reduction <add>, %152, %cst_65 [1] : vector<16x16xf32> to vector<16xf32>
    %154 = vector.shape_cast %153 : vector<16xf32> to vector<16x1xf32>
    %155 = tpu.reciprocal %154 {approx = true} : vector<16x1xf32> -> vector<16x1xf32>
    %156 = vector.broadcast %155 : vector<16x1xf32> to vector<16x16xf32>
    %157 = arith.mulf %152, %156 : vector<16x16xf32>
    %158 = vector.extract_strided_slice %127 {offsets = [0, 16], sizes = [16, 16], strides = [1, 1]} : vector<16x32xf32> to vector<16x16xf32>
    %cst_66 = arith.constant dense<0.000000e+00> : vector<16x16xf32>
    %159 = tpu.matmul %157, %158, %cst_66 {dimension_numbers = #tpu.dot_dimension_numbers<[1], [0], [0], [1], [0, 0, 1, 1], [], []>} : vector<16x16xf32>, vector<16x16xf32>, vector<16x16xf32> -> vector<16x16xf32>
    %160 = tpu.concatenate %143, %159 in 1 : vector<16x16xf32>, vector<16x16xf32> -> vector<16x32xf32>
    %cst_67 = arith.constant dense<0.000000e+00> : vector<16x32xf32>
    %161 = tpu.matmul %160, %111, %cst_67 {dimension_numbers = #tpu.dot_dimension_numbers<[1], [0], [0], [1], [0, 0, 1, 1], [], []>} : vector<16x32xf32>, vector<32x32xf32>, vector<16x32xf32> -> vector<16x32xf32>
    %162 = vector.broadcast %115 : vector<1x32xf32> to vector<16x32xf32>
    %163 = arith.addf %161, %162 : vector<16x32xf32>
    %164 = arith.addf %109, %163 : vector<16x32xf32>
    %cst_68 = arith.constant dense<0.000000e+00> : vector<16xf32>
    %165 = vector.multi_reduction <add>, %164, %cst_68 [1] : vector<16x32xf32> to vector<16xf32>
    %166 = vector.shape_cast %165 : vector<16xf32> to vector<16x1xf32>
    %cst_69 = arith.constant 3.200000e+01 : f32
    %167 = vector.broadcast %cst_69 : f32 to vector<16x1xf32>
    %168 = arith.divf %166, %167 : vector<16x1xf32>
    %169 = vector.broadcast %168 : vector<16x1xf32> to vector<16x32xf32>
    %170 = arith.subf %164, %169 : vector<16x32xf32>
    %171 = arith.mulf %170, %170 : vector<16x32xf32>
    %cst_70 = arith.constant dense<0.000000e+00> : vector<16xf32>
    %172 = vector.multi_reduction <add>, %171, %cst_70 [1] : vector<16x32xf32> to vector<16xf32>
    %173 = vector.shape_cast %172 : vector<16xf32> to vector<16x1xf32>
    %cst_71 = arith.constant 3.200000e+01 : f32
    %174 = vector.broadcast %cst_71 : f32 to vector<16x1xf32>
    %175 = arith.divf %173, %174 : vector<16x1xf32>
    %176 = vector.broadcast %168 : vector<16x1xf32> to vector<16x32xf32>
    %177 = arith.subf %164, %176 : vector<16x32xf32>
    %cst_72 = arith.constant 9.99999974E-6 : f32
    %178 = vector.broadcast %cst_72 : f32 to vector<16x1xf32>
    %179 = arith.addf %175, %178 : vector<16x1xf32>
    %180 = math.rsqrt %179 : vector<16x1xf32>
    %181 = vector.broadcast %180 : vector<16x1xf32> to vector<16x32xf32>
    %182 = arith.mulf %177, %181 : vector<16x32xf32>
    %183 = vector.broadcast %116 : vector<1x32xf32> to vector<16x32xf32>
    %184 = arith.mulf %182, %183 : vector<16x32xf32>
    %185 = vector.broadcast %117 : vector<1x32xf32> to vector<16x32xf32>
    %186 = arith.addf %184, %185 : vector<16x32xf32>
    %cst_73 = arith.constant dense<0.000000e+00> : vector<16x64xf32>
    %187 = tpu.matmul %186, %112, %cst_73 {dimension_numbers = #tpu.dot_dimension_numbers<[1], [0], [0], [1], [0, 0, 1, 1], [], []>} : vector<16x32xf32>, vector<32x64xf32>, vector<16x64xf32> -> vector<16x64xf32>
    %188 = vector.broadcast %118 : vector<1x64xf32> to vector<16x64xf32>
    %189 = arith.addf %187, %188 : vector<16x64xf32>
    %cst_74 = arith.constant 0.000000e+00 : f32
    %190 = vector.broadcast %cst_74 : f32 to vector<16x64xf32>
    %191 = arith.maximumf %189, %190 : vector<16x64xf32>
    %cst_75 = arith.constant dense<0.000000e+00> : vector<16x32xf32>
    %192 = tpu.matmul %191, %113, %cst_75 {dimension_numbers = #tpu.dot_dimension_numbers<[1], [1], [0], [0], [0, 0, 1, 0], [], []>} : vector<16x64xf32>, vector<32x64xf32>, vector<16x32xf32> -> vector<16x32xf32>
    %193 = vector.broadcast %119 : vector<1x32xf32> to vector<16x32xf32>
    %194 = arith.addf %192, %193 : vector<16x32xf32>
    %195 = arith.addf %186, %194 : vector<16x32xf32>
    %cst_76 = arith.constant dense<0.000000e+00> : vector<16xf32>
    %196 = vector.multi_reduction <add>, %195, %cst_76 [1] : vector<16x32xf32> to vector<16xf32>
    %197 = vector.shape_cast %196 : vector<16xf32> to vector<16x1xf32>
    %cst_77 = arith.constant 3.200000e+01 : f32
    %198 = vector.broadcast %cst_77 : f32 to vector<16x1xf32>
    %199 = arith.divf %197, %198 : vector<16x1xf32>
    %200 = vector.broadcast %199 : vector<16x1xf32> to vector<16x32xf32>
    %201 = arith.subf %195, %200 : vector<16x32xf32>
    %202 = arith.mulf %201, %201 : vector<16x32xf32>
    %cst_78 = arith.constant dense<0.000000e+00> : vector<16xf32>
    %203 = vector.multi_reduction <add>, %202, %cst_78 [1] : vector<16x32xf32> to vector<16xf32>
    %204 = vector.shape_cast %203 : vector<16xf32> to vector<16x1xf32>
    %cst_79 = arith.constant 3.200000e+01 : f32
    %205 = vector.broadcast %cst_79 : f32 to vector<16x1xf32>
    %206 = arith.divf %204, %205 : vector<16x1xf32>
    %207 = vector.broadcast %199 : vector<16x1xf32> to vector<16x32xf32>
    %208 = arith.subf %195, %207 : vector<16x32xf32>
    %cst_80 = arith.constant 9.99999974E-6 : f32
    %209 = vector.broadcast %cst_80 : f32 to vector<16x1xf32>
    %210 = arith.addf %206, %209 : vector<16x1xf32>
    %211 = math.rsqrt %210 : vector<16x1xf32>
    %212 = vector.broadcast %211 : vector<16x1xf32> to vector<16x32xf32>
    %213 = arith.mulf %208, %212 : vector<16x32xf32>
    %214 = vector.broadcast %120 : vector<1x32xf32> to vector<16x32xf32>
    %215 = arith.mulf %213, %214 : vector<16x32xf32>
    %216 = vector.broadcast %121 : vector<1x32xf32> to vector<16x32xf32>
    %217 = arith.addf %215, %216 : vector<16x32xf32>
    %218 = vector.extract_strided_slice %217 {offsets = [0, 0], sizes = [1, 32], strides = [1, 1]} : vector<16x32xf32> to vector<1x32xf32>
    %219 = vector.extract_strided_slice %217 {offsets = [8, 0], sizes = [1, 32], strides = [1, 1]} : vector<16x32xf32> to vector<1x32xf32>
    %220 = tpu.concatenate %218, %219 in 0 : vector<1x32xf32>, vector<1x32xf32> -> vector<2x32xf32>
    %c0_81 = arith.constant 0 : index
    %c1024_82 = arith.constant 1024 : index
    %221 = vector.load %arg2[%c0_81, %c1024_82] : memref<32x1536xf32, #tpu.memory_space<vmem>>, vector<32x512xf32>
    %c0_83 = arith.constant 0 : index
    %c2048 = arith.constant 2048 : index
    %222 = vector.load %arg4[%c0_83, %c2048] : memref<1x2688xf32, #tpu.memory_space<vmem>>, vector<1x512xf32>
    %c0_84 = arith.constant 0 : index
    %c2560 = arith.constant 2560 : index
    %223 = vector.load %arg4[%c0_84, %c2560] : memref<1x2688xf32, #tpu.memory_space<vmem>>, vector<1x2xf32>
    %cst_85 = arith.constant dense<0.000000e+00> : vector<2x512xf32>
    %224 = tpu.matmul %220, %221, %cst_85 {dimension_numbers = #tpu.dot_dimension_numbers<[1], [0], [0], [1], [0, 0, 1, 1], [], []>} : vector<2x32xf32>, vector<32x512xf32>, vector<2x512xf32> -> vector<2x512xf32>
    %225 = vector.broadcast %222 : vector<1x512xf32> to vector<2x512xf32>
    %226 = arith.addf %224, %225 : vector<2x512xf32>
    %227 = math.tanh %226 : vector<2x512xf32>
    %c0_86 = arith.constant 0 : index
    %c0_87 = arith.constant 0 : index
    %228 = vector.load %arg3[%c0_86, %c0_87] : memref<2x512xf32, #tpu.memory_space<vmem>>, vector<2x512xf32>
    %cst_88 = arith.constant dense<0.000000e+00> : vector<2x2xf32>
    %229 = tpu.matmul %227, %228, %cst_88 {dimension_numbers = #tpu.dot_dimension_numbers<[1], [1], [0], [0], [0, 0, 1, 0], [], []>} : vector<2x512xf32>, vector<2x512xf32>, vector<2x2xf32> -> vector<2x2xf32>
    %230 = vector.broadcast %223 : vector<1x2xf32> to vector<2x2xf32>
    %231 = arith.addf %229, %230 : vector<2x2xf32>
    %232 = arith.negf %231 : vector<2x2xf32>
    %233 = math.exp %232 : vector<2x2xf32>
    %cst_89 = arith.constant 1.000000e+00 : f32
    %234 = vector.broadcast %cst_89 : f32 to vector<2x2xf32>
    %235 = arith.addf %234, %233 : vector<2x2xf32>
    %236 = arith.divf %234, %235 : vector<2x2xf32>
    %c0_90 = arith.constant 0 : index
    %c0_91 = arith.constant 0 : index
    %237 = vector.load %arg5[%c0_90, %c0_91] : memref<2x2xf32, #tpu.memory_space<vmem>>, vector<2x2xf32>
    tpu.vector_store %arg5[%c0_90, %c0_91], %236 {strides = array<i32>} : memref<2x2xf32, #tpu.memory_space<vmem>>, vector<2x2xf32>,
    return
  }
}

</mosaic_0001>

<bundles_post_ra>
// kernel: bert_classifier_forward.1
= control target key start
LH: loop header
LB: loop body
LE: loop exit
PB: predicated region body
PF: predicated region fallthrough
CT: control target
= control target key end

     0   :  { %10 = vsyncpa [#allocation3], 0  ;;  %s3080_s0 = inlined_call_operand.vmem [shape: f32[16,32], index: 0, kind: input, shape index: {}]   ;;  %s3081_s1 = inlined_call_operand.vmem [shape: f32[16,16], index: 1, kind: input, shape index: {}]   ;;  %s3082_s2 = inlined_call_operand.hbm [shape: f32[32,1536], index: 2, kind: input, shape index: {}]   ;;  %s3083_s3 = inlined_call_operand.vmem [shape: f32[2,512], index: 3, kind: input, shape index: {}]   ;;  %s3084_s4 = inlined_call_operand.vmem [shape: f32[1,2688], index: 4, kind: input, shape index: {}]   ;;  %s3085_s5 = inlined_call_operand.hbm [shape: f32[2,2], index: 5, kind: output, shape index: {}]  }
   0x1   :  { %11 = vsyncpa [#allocation4], 0  ;;  %s2775_s18 = smov [#allocation2]   ;;  %s2727_s22 = scalar_lea.hbm %s3082_s2, 6144 }
   0x2   :  { %s21_s19 = sshll.u32 %s2775_s18, 4  ;;  %p2728_p0 = scmp.ne.s32.totalorder %s3082_s2, %s2727_s22  ;;  %s22_s19 = int_to_ptr.vmem [resolvable:$true] %s21_s19 }
   0x3   :  { %p2731_p1 = scmp.lt.u32.totalorder %s2727_s22, %s3082_s2 }
   0x5   :  { %p2733_p2 = pnand %p2731_p1, %p2728_p0 }
   0x7   :  { %2736 = shalt.err (!%p2733_p2)
}
   0x8   :  { %s2737_s27 = scalar_lea.vmem %s22_s19, 6144  ;;  %p2742_p4 = scmp.lt.s32.totalorder %s22_s19, %s22_s19 }
   0x9   :  { %p2738_p3 = scmp.ne.s32.totalorder %s22_s19, %s2737_s27  ;;  %p2743_p5 = scmp.lt.s32.totalorder %s2737_s27, %s2737_s27 }
   0xb   :  { %p2744_p6 = por %p2743_p5, %p2742_p4 }
   0xd   :  { %p2745_p7 = pnand %p2744_p6, %p2738_p3 }
   0xf   :  { %2748 = shalt.err (!%p2745_p7)
}
  0x10   :  { %s2776_s28 = smov 1536   ;;  %s2777_s29 = smov 96  }
  0x11   :  { %27 = dma.hbm_to_vmem [thread:$0]  %s3082_s2, 6144, %s22_s19, [#allocation3], %s2776_s28, %s2776_s28, %s2777_s29  }
  0x12   :  { %2771 = dma.done.wait [#allocation3], 6144  }
  0x13   :  { %2772 = vsyncadd [#allocation3], 4294961152  ;;  %vm69_vm0 = vcmask 261120   ;;  %v39_v0 = vld [vmem:[#allocation2] sm:$0xff]  ;;  %v2839_v7 = vld [vmem:[%s3080_s0 + $0x8] sm:$0xff]  ;;  %vm157_vm1 = vcmask 130048  }
  0x14   :  { %v40_v1 = vld [vmem:[#allocation2 + $0x60] sm:$0xff]  ;;  %vm2853_vm2 = vmpackc.low %vm157_vm1, %vm157_vm1  ;;  %v2865_v19 = vld [vmem:[%s3081_s1 + $0x8] sm:$0xff]  ;;  %s2778_s15 = smov 64   ;;  %s2779_s16 = smov 80   ;;  %vm787_vm3 = vcmask 523264   ;;  %vm1810_vm5 = vcmask 1040384  }
  0x15   :  { %v41_v2 = vld [vmem:[#allocation2 + $0xc0] sm:$0xff]  ;;  %v2484_v3 = vpack.c.bf16 %v40_v1, %v39_v0  ;;  %s2781_s17 = smov 48   ;;  %s2782_s18 = smov 16   ;;  %vm2919_vm4 = vmpackc.low %vm787_vm3, %vm787_vm3  ;;  %vm2175_vm6 = vcmask 9216  }
  0x16   :  { %v42_v4 = vld [vmem:[#allocation2 + $0x120] sm:$0xff]  ;;  %s2785_s26 = smov [#allocation5]  }
  0x17   :  { %v2832_v5 = vld [vmem:[%s3080_s0] sm:$0xff]  ;;  %v2488_v6 = vpack.c.bf16 %v42_v4, %v41_v2  ;;  %2485 = vmatprep.subr.bf16.mxu0 %v2484_v3  ;;  %s2183_s27 = sshll.u32 %s2785_s26, 4  ;;  %s2184_s27 = int_to_ptr.vmem [resolvable:$true] %s2183_s27 }
  0x18   :  { %2348 = vmatprep.mubr.msk.f32.mxu0 %vm69_vm0, %v2832_v5  ;;  %2487 = vmatpush3.bf16.msra.mxu0 %v2484_v3  ;;  %v2192_v8 = vld [vmem:[%s3084_s4] ss:$0 sm:$0xff]  ;;  %s2749_s28 = scalar_lea.vmem %s2184_s27, 32  ;;  %p2754_p9 = scmp.lt.s32.totalorder %s2184_s27, %s2184_s27 }
  0x19   :  { %2489 = vmatprep.subr.bf16.mxu0 %v2488_v6  ;;  %v2870_v20 = vld [vmem:[%s3081_s1] sm:$0xff]  ;;  %s2780_s1 = smov 112   ;;  %p2750_p8 = scmp.ne.s32.totalorder %s2184_s27, %s2749_s28 }
  0x1a   :  { %p2755_p10 = scmp.lt.s32.totalorder %s2749_s28, %s2749_s28 }
  0x1c   :  { %2491 = vmatpush3.bf16.msra.mxu0 %v2488_v6  ;;  %p2756_p11 = por %p2755_p10, %p2754_p9 }
  0x1e   :  { %p2757_p12 = pnand %p2756_p11, %p2750_p8 }
  0x1f   :  { %2349 = vmatmul.mubr.msk.f32.vlgmr.msra.gmra.mrb[0].mxu0 %vm69_vm0, %v2839_v7 }
  0xf2   :  { %v2350_v9 = vpop.f32.mrb[0].mxu0 }
  0xf3   :  { %v148_v10 = vadd.f32 %v2350_v9, %v2192_v8  ;;  %v142_v11 = vpop.f32.mrb[1].mxu0 }
  0xf4   :  { %v143_v12 = vadd.f32 %v2192_v8, %v142_v11 }
  0xf6   :  { %2355 = vmatprep.mubr.msk.f32.mxu1 %vm157_vm1, %v143_v12  ;;  %v2847_v13 = vpack.i.bf16 %v148_v10, %v143_v12 }
  0xf8   :  { %2627 = vrot.lane.b32.xlu0 %v2847_v13, %s2777_s29 }
 0x16a   :  { %v2628_v14 = vpop.permute.xlu0 %2627 }
 0x16b   :  { %v2630_v15 = vunpack.i.h.bf16 %v2628_v14  ;;  %v2629_v16 = vunpack.i.l.bf16 %v2628_v14 }
 0x16d   :  { %v2492_v18 = vpack.c.bf16 %v2630_v15, %v2629_v16 }
 0x16f   :  { %2494 = vmatprep.subr.msk.bf16.mxu1 %vm2853_vm2, %v2492_v18 }
 0x170   :  { %2497 = vmatpush3.bf16.xpose.msk.msra.mxu1 %vm2853_vm2, %v2492_v18 }
 0x177   :  { %2356 = vmatmul.mubr.msk.f32.vlgmr.msra.gmra.mrb[0].mxu1 %vm157_vm1, %v148_v10 }
 0x24a   :  { %v2357_v21 = vpop.f32.mrb[0].mxu1 }
 0x24b   :  { %v238_v22 = vadd.f32 %v2357_v21, %v2865_v19  ;;  %v232_v23 = vpop.f32.mrb[1].mxu1 }
 0x24c   :  { %v233_v24 = vadd.f32 %v232_v23, %v2870_v20  ;;  %v43_v23 = vld [vmem:[#allocation2 + $0x8] sm:$0xff] }
 0x24d   :  { %v244_v25 = vsel %vm157_vm1, %v238_v22, -inf }
 0x24e   :  { %245 = vmax.xlane.f32.xlu1 %v244_v25  ;;  %v241_v26 = vsel %vm157_vm1, %v233_v24, -inf }
 0x24f   :  { %242 = vmax.xlane.f32.xlu0 %v241_v26  ;;  %v46_v26 = vld [vmem:[#allocation2 + $0x128] sm:$0xff] }
 0x25f   :  { %2632 = vrot.lane.b32.xlu1 %v2847_v13, %s2778_s15 }
 0x263   :  { %2637 = vrot.lane.b32.xlu1 %v2847_v13, %s2779_s16 }
 0x265   :  { %352 = vrot.lane.b32.xlu0 %v148_v10, %s2780_s1 }
 0x2db   :  { %v246_v27 = vpop.xlane.xlu1 %245 }
 0x2dc   :  { %v248_v28 = vsub.f32 %v238_v22, %v246_v27  ;;  %v243_v29 = vpop.xlane.xlu0 %242 }
 0x2dd   :  { %v247_v30 = vsub.f32 %v233_v24, %v243_v29  ;;  %v45_v24 = vld [vmem:[#allocation2 + $0xc8] sm:$0xff] }
 0x2de   :  { %v251_v31 = vmul.f32 1.442695, %v248_v28  ;;  %v2516_v27 = vpack.c.bf16 %v46_v26, %v45_v24 }
 0x2df   :  { %v249_v32 = vmul.f32 1.442695, %v247_v30  ;;  %v2633_v33 = vpop.permute.xlu1 %2632 }
 0x2e0   :  { %2667 = vpow2.f32 %v251_v31  ;;  %v2635_v34 = vunpack.i.h.bf16 %v2633_v33  ;;  %v2634_v35 = vunpack.i.l.bf16 %v2633_v33  ;;  %v353_v52 = vpop.permute.xlu0 %352 }
 0x2e1   :  { %2669 = vpow2.f32 %v249_v32 }
 0x2e2   :  { %v2498_v36 = vpack.c.bf16 %v2635_v34, %v2634_v35  ;;  %v2207_v34 = vld [vmem:[%s3084_s4 + $0x1] ss:$0 sm:$0xff] }
 0x2e3   :  { %v2638_v37 = vpop.permute.xlu1 %2637 }
 0x2e4   :  { %v2640_v38 = vunpack.i.h.bf16 %v2638_v37  ;;  %v2639_v39 = vunpack.i.l.bf16 %v2638_v37  ;;  %2499 = vmatprep.subr.bf16.mxu1 %v2498_v36 }
 0x2e5   :  { %2501 = vmatpush3.bf16.msra.mxu1 %v2498_v36 }
 0x2e6   :  { %v2502_v40 = vpack.c.bf16 %v2640_v38, %v2639_v39 }
 0x2e8   :  { %2504 = vmatprep.subr.msk.bf16.mxu1 %vm2853_vm2, %v2502_v40 }
 0x2ea   :  { %v2668_v41 = vpop.eup %2667 }
 0x2eb   :  { %v256_v42 = vsel %vm157_vm1, %v2668_v41, 0.0  ;;  %v2670_v43 = vpop.eup %2669 }
 0x2ec   :  { %257 = vadd.xlane.f32.xlu1 %v256_v42  ;;  %v253_v44 = vsel %vm157_vm1, %v2670_v43, 0.0 }
 0x2f0   :  { %254 = vadd.xlane.f32.xlu1 %v253_v44 }
 0x301   :  { %350 = vrot.lane.b32.xlu1 %v143_v12, %s2780_s1 }
 0x379   :  { %v258_v45 = vpop.xlane.xlu1 %257 }
 0x37a   :  { %2671 = vrcp.f32 %v258_v45 }
 0x37d   :  { %v255_v46 = vpop.xlane.xlu1 %254 }
 0x37e   :  { %2673 = vrcp.f32 %v255_v46 }
 0x381   :  { %v351_v51 = vpop.permute.xlu1 %350 }
 0x384   :  { %v2672_v47 = vpop.eup %2671 }
 0x385   :  { %v262_v50 = vmul.f32 %v2672_v47, %v2668_v41 }
 0x388   :  { %v2674_v48 = vpop.eup %2673 }
 0x389   :  { %v261_v49 = vmul.f32 %v2674_v48, %v2670_v43 }
 0x38b   :  { %2362 = vmatprep.mubr.msk.f32.mxu1 %vm157_vm1, %v261_v49 }
 0x38c   :  { %2363 = vmatmul.mubr.msk.f32.vlgmr.msra.gmra.mrb[2].mxu1 %vm157_vm1, %v262_v50 }
 0x38d   :  { %2507 = vmatpush3.bf16.xpose.msk.msra.mxu1 %vm2853_vm2, %v2502_v40  ;;  %2369 = vmatprep.mubr.msk.f32.mxu1 %vm157_vm1, %v351_v51 }
 0x394   :  { %2370 = vmatmul.mubr.msk.f32.vlgmr.msra.gmra.mrb[4].mxu1 %vm157_vm1, %v353_v52  ;;  %v48_v52 = vld [vmem:[#allocation2 + $0x70] sm:$0xff] }
 0x45f   :  { %v2364_v53 = vpop.f32.mrb[2].mxu1 }
 0x460   :  { %v341_v54 = vpop.f32.mrb[3].mxu1 }
 0x467   :  { %v2371_v55 = vpop.f32.mrb[4].mxu1 }
 0x468   :  { %v438_v56 = vadd.f32 %v2371_v55, %v2865_v19  ;;  %v432_v57 = vpop.f32.mrb[5].mxu1  ;;  %v50_v55 = vld [vmem:[#allocation2 + $0x130] sm:$0xff] }
 0x469   :  { %v433_v58 = vadd.f32 %v432_v57, %v2870_v20  ;;  %v51_v57 = vld [vmem:[#allocation2 + $0x18] sm:$0xff] }
 0x46a   :  { %v444_v59 = vsel %vm157_vm1, %v438_v56, -inf }
 0x46b   :  { %445 = vmax.xlane.f32.xlu0 %v444_v59  ;;  %v441_v60 = vsel %vm157_vm1, %v433_v58, -inf  ;;  %v53_v59 = vld [vmem:[#allocation2 + $0xd8] sm:$0xff] }
 0x46c   :  { %442 = vmax.xlane.f32.xlu1 %v441_v60 }
 0x4f8   :  { %v446_v61 = vpop.xlane.xlu0 %445 }
 0x4f9   :  { %v448_v62 = vsub.f32 %v438_v56, %v446_v61  ;;  %v443_v63 = vpop.xlane.xlu1 %442 }
 0x4fa   :  { %v447_v0 = vsub.f32 %v433_v58, %v443_v63  ;;  %v52_v58 = vld [vmem:[#allocation2 + $0x78] sm:$0xff] }
 0x4fb   :  { %v451_v1 = vmul.f32 1.442695, %v448_v62  ;;  %v2528_v60 = vpack.c.bf16 %v52_v58, %v51_v57  ;;  %v54_v62 = vld [vmem:[#allocation2 + $0x138] sm:$0xff]  ;;  %v2222_v58 = vld [vmem:[%s3084_s4 + $0x6] ss:$0 sm:$0xff] }
 0x4fc   :  { %v449_v2 = vmul.f32 1.442695, %v447_v0  ;;  %v2534_v63 = vpack.c.bf16 %v54_v62, %v53_v59 }
 0x4fd   :  { %2675 = vpow2.f32 %v451_v1 }
 0x4fe   :  { %2677 = vpow2.f32 %v449_v2 }
 0x507   :  { %v2676_v3 = vpop.eup %2675 }
 0x508   :  { %v456_v4 = vsel %vm157_vm1, %v2676_v3, 0.0  ;;  %v2678_v6 = vpop.eup %2677 }
 0x509   :  { %457 = vadd.xlane.f32.xlu1 %v456_v4  ;;  %v453_v8 = vsel %vm157_vm1, %v2678_v6, 0.0 }
 0x50d   :  { %454 = vadd.xlane.f32.xlu1 %v453_v8 }
 0x51e   :  { %2642 = vrot.lane.b32.xlu1 %v2847_v13, %s2781_s17  ;;  %v44_v13 = vld [vmem:[#allocation2 + $0x68] sm:$0xff] }
 0x51f   :  { %v2512_v25 = vpack.c.bf16 %v44_v13, %v43_v23 }
 0x596   :  { %v458_v9 = vpop.xlane.xlu1 %457 }
 0x597   :  { %2679 = vrcp.f32 %v458_v9  ;;  %v2210_v9 = vld [vmem:[%s3084_s4 + $0x2] ss:$0 sm:$0xff] }
 0x59a   :  { %v455_v10 = vpop.xlane.xlu1 %454 }
 0x59b   :  { %2681 = vrcp.f32 %v455_v10 }
 0x59e   :  { %v2643_v11 = vpop.permute.xlu1 %2642 }
 0x59f   :  { %v2645_v12 = vunpack.i.h.bf16 %v2643_v11  ;;  %v2644_v14 = vunpack.i.l.bf16 %v2643_v11 }
 0x5a1   :  { %v2508_v15 = vpack.c.bf16 %v2645_v12, %v2644_v14  ;;  %v2680_v16 = vpop.eup %2679  ;;  %v2211_v14 = vld [vmem:[%s3084_s4 + $0x3] ss:$0 sm:$0xff] }
 0x5a2   :  { %v462_v22 = vmul.f32 %v2680_v16, %v2676_v3 }
 0x5a3   :  { %2509 = vmatprep.subr.bf16.mxu0 %v2508_v15 }
 0x5a4   :  { %2511 = vmatpush3.bf16.msra.mxu0 %v2508_v15 }
 0x5a5   :  { %v2682_v18 = vpop.eup %2681  ;;  %2513 = vmatprep.subr.bf16.mxu0 %v2512_v25 }
 0x5a6   :  { %v461_v21 = vmul.f32 %v2682_v18, %v2678_v6 }
 0x5a8   :  { %2376 = vmatprep.mubr.msk.f32.mxu0 %vm157_vm1, %v461_v21 }
 0x5a9   :  { %2377 = vmatmul.mubr.msk.f32.vlgmr.msra.gmra.mrb[2].mxu0 %vm157_vm1, %v462_v22  ;;  %v2212_v22 = vld [vmem:[%s3084_s4 + $0x4] ss:$0 sm:$0xff] }
 0x5aa   :  { %2515 = vmatpush3.bf16.msra.mxu0 %v2512_v25 }
 0x5ab   :  { %2517 = vmatprep.subr.bf16.mxu0 %v2516_v27 }
 0x5ae   :  { %2519 = vmatpush3.bf16.msra.mxu0 %v2516_v27 }
 0x5af   :  { %2530 = vmatprep.subr.msk.bf16.mxu0 %vm2919_vm4, %v2528_v60 }
 0x67c   :  { %v2378_v28 = vpop.f32.mrb[2].mxu0 }
 0x67d   :  { %554 = vrot.lane.b32.xlu1 %v2378_v28, %s2782_s18  ;;  %v541_v29 = vpop.f32.mrb[3].mxu0  ;;  %v2215_v28 = vld [vmem:[%s3084_s4 + $0x5] ss:$0 sm:$0xff] }
 0x67e   :  { %552 = vrot.lane.b32.xlu0 %v541_v29, %s2782_s18 }
 0x6ef   :  { %v555_v30 = vpop.permute.xlu1 %554 }
 0x6f0   :  { %v553_v31 = vpop.permute.xlu0 %552  ;;  %v559_v33 = vsel %vm157_vm1, %v2364_v53, %v555_v30 }
 0x6f1   :  { %v558_v32 = vsel %vm157_vm1, %v341_v54, %v553_v31  ;;  %v49_v54 = vld [vmem:[#allocation2 + $0xd0] sm:$0xff] }
 0x6f2   :  { %2387 = vmatprep.mubr.msk.f32.mxu0 %vm69_vm0, %v558_v32  ;;  %v2524_v56 = vpack.c.bf16 %v50_v55, %v49_v54 }
 0x6f3   :  { %2388 = vmatmul.mubr.msk.f32.vlgmr.msra.gmra.mrb[4].mxu0 %vm69_vm0, %v559_v33 }
 0x6f4   :  { %2533 = vmatpush3.bf16.xpose.msk.msra.mxu0 %vm2919_vm4, %v2528_v60 }
 0x6f5   :  { %2536 = vmatprep.subr.msk.bf16.mxu0 %vm2919_vm4, %v2534_v63 }
 0x6fc   :  { %2539 = vmatpush3.bf16.xpose.msk.msra.mxu0 %vm2919_vm4, %v2534_v63  ;;  %v2223_v63 = vld [vmem:[%s3084_s4 + $0x7] ss:$0 sm:$0xff] }
 0x7c6   :  { %v2389_v35 = vpop.f32.mrb[4].mxu0 }
 0x7c7   :  { %v644_v36 = vadd.f32 %v2389_v35, %v2207_v34  ;;  %v638_v37 = vpop.f32.mrb[5].mxu0 }
 0x7c8   :  { %v639_v38 = vadd.f32 %v2207_v34, %v638_v37 }
 0x7c9   :  { %v648_v39 = vadd.f32 %v644_v36, %v2839_v7 }
 0x7ca   :  { %v647_v40 = vadd.f32 %v639_v38, %v2832_v5  ;;  %v47_v5 = vld [vmem:[#allocation2 + $0x10] sm:$0xff] }
 0x7cb   :  { %v652_v41 = vsel %vm69_vm0, %v648_v39, 0.0  ;;  %v2520_v53 = vpack.c.bf16 %v48_v52, %v47_v5 }
 0x7cc   :  { %653 = vadd.xlane.f32.xlu0 %v652_v41  ;;  %v649_v42 = vsel %vm69_vm0, %v647_v40, 0.0 }
 0x7cd   :  { %650 = vadd.xlane.f32.xlu1 %v649_v42  ;;  %2521 = vmatprep.subr.bf16.mxu1 %v2520_v53 }
 0x7ce   :  { %2523 = vmatpush3.bf16.msra.mxu1 %v2520_v53 }
 0x7cf   :  { %2525 = vmatprep.subr.bf16.mxu1 %v2524_v56 }
 0x7d2   :  { %2527 = vmatpush3.bf16.msra.mxu1 %v2524_v56 }
 0x859   :  { %v654_v43 = vpop.xlane.xlu0 %653 }
 0x85a   :  { %v657_v44 = vmul.f32 0.03125, %v654_v43  ;;  %v651_v45 = vpop.xlane.xlu1 %650 }
 0x85b   :  { %v656_v46 = vmul.f32 0.03125, %v651_v45 }
 0x85c   :  { %v659_v47 = vsub.f32 %v648_v39, %v657_v44 }
 0x85d   :  { %v658_v48 = vsub.f32 %v647_v40, %v656_v46 }
 0x85e   :  { %v661_v49 = vmul.f32 %v659_v47, %v659_v47 }
 0x85f   :  { %v660_v50 = vmul.f32 %v658_v48, %v658_v48 }
 0x860   :  { %v665_v51 = vsel %vm69_vm0, %v661_v49, 0.0 }
 0x861   :  { %666 = vadd.xlane.f32.xlu0 %v665_v51  ;;  %v662_v7 = vsel %vm69_vm0, %v660_v50, 0.0  ;;  %v927_v50 = vld [vmem:[#allocation2 + $0xe0] sm:$0xff] }
 0x862   :  { %663 = vadd.xlane.f32.xlu1 %v662_v7  ;;  %v928_v51 = vld [vmem:[#allocation2 + $0x140] sm:$0xff] }
 0x863   :  { %v2544_v7 = vpack.c.bf16 %v928_v51, %v927_v50 }
 0x8ee   :  { %v667_v0 = vpop.xlane.xlu0 %666 }
 0x8ef   :  { %v669_v1 = vmul.f32 0.03125, %v667_v0  ;;  %v664_v2 = vpop.xlane.xlu1 %663 }
 0x8f0   :  { %v668_v3 = vmul.f32 0.03125, %v664_v2 }
 0x8f1   :  { %v671_v4 = vadd.f32 1e-05, %v669_v1 }
 0x8f2   :  { %v670_v6 = vadd.f32 1e-05, %v668_v3 }
 0x8f3   :  { %2683 = vrsqrt.f32 %v671_v4  ;;  %v2224_v4 = vld [vmem:[%s3084_s4 + $0x8] ss:$0 sm:$0xff] }
 0x8f4   :  { %2685 = vrsqrt.f32 %v670_v6 }
 0x8fd   :  { %v2684_v8 = vpop.eup %2683 }
 0x8fe   :  { %v2686_v10 = vpop.eup %2685  ;;  %v675_v11 = vmul.f32 %v2684_v8, %v659_v47  ;;  %v925_v47 = vld [vmem:[#allocation2 + $0x20] sm:$0xff] }
 0x8ff   :  { %v674_v12 = vmul.f32 %v2686_v10, %v658_v48  ;;  %v926_v48 = vld [vmem:[#allocation2 + $0x80] sm:$0xff] }
 0x900   :  { %v683_v15 = vmul.f32 %v2210_v9, %v675_v11  ;;  %v2540_v49 = vpack.c.bf16 %v926_v48, %v925_v47 }
 0x901   :  { %v682_v16 = vmul.f32 %v2210_v9, %v674_v12 }
 0x902   :  { %v691_v21 = vadd.f32 %v2211_v14, %v683_v15  ;;  %2541 = vmatprep.subr.bf16.mxu1 %v2540_v49 }
 0x903   :  { %v690_v18 = vadd.f32 %v2211_v14, %v682_v16 }
 0x905   :  { %2398 = vmatprep.mubr.msk.f32.mxu1 %vm69_vm0, %v690_v18 }
 0x906   :  { %2399 = vmatmul.mubr.msk.f32.vlgmr.msra.gmra.mrb[6].mxu1 %vm69_vm0, %v691_v21 }
 0x907   :  { %2543 = vmatpush3.bf16.msra.mxu1 %v2540_v49 }
 0x908   :  { %2545 = vmatprep.subr.bf16.mxu1 %v2544_v7 }
 0x90b   :  { %2547 = vmatpush3.bf16.msra.mxu1 %v2544_v7 }
 0x9d9   :  { %v2400_v23 = vpop.f32.mrb[6].mxu1 }
 0x9da   :  { %v776_v13 = vadd.f32 %v2400_v23, %v2212_v22  ;;  %v770_v24 = vpop.f32.mrb[7].mxu1 }
 0x9db   :  { %v771_v25 = vadd.f32 %v2212_v22, %v770_v24 }
 0x9dc   :  { %v780_v27 = vmax.f32 %v776_v13, 0.0 }
 0x9dd   :  { %v779_v26 = vmax.f32 %v771_v25, 0.0 }
 0x9df   :  { %2409 = vmatprep.mubr.msk.f32.mxu0 %vm787_vm3, %v779_v26 }
 0x9e0   :  { %2410 = vmatmul.mubr.msk.f32.vlgmr.msra.gmra.mrb[6].mxu0 %vm787_vm3, %v780_v27 }
 0xab3   :  { %v2411_v29 = vpop.f32.mrb[6].mxu0 }
 0xab4   :  { %v878_v30 = vadd.f32 %v2411_v29, %v2215_v28  ;;  %v872_v31 = vpop.f32.mrb[7].mxu0 }
 0xab5   :  { %v873_v32 = vadd.f32 %v2215_v28, %v872_v31 }
 0xab6   :  { %v882_v33 = vadd.f32 %v878_v30, %v691_v21 }
 0xab7   :  { %v881_v34 = vadd.f32 %v873_v32, %v690_v18 }
 0xab8   :  { %v886_v35 = vsel %vm69_vm0, %v882_v33, 0.0 }
 0xab9   :  { %887 = vadd.xlane.f32.xlu0 %v886_v35  ;;  %v883_v36 = vsel %vm69_vm0, %v881_v34, 0.0 }
 0xaba   :  { %884 = vadd.xlane.f32.xlu1 %v883_v36 }
 0xb46   :  { %v888_v37 = vpop.xlane.xlu0 %887 }
 0xb47   :  { %v890_v38 = vmul.f32 0.03125, %v888_v37  ;;  %v885_v39 = vpop.xlane.xlu1 %884 }
 0xb48   :  { %v889_v40 = vmul.f32 0.03125, %v885_v39 }
 0xb49   :  { %v892_v41 = vsub.f32 %v882_v33, %v890_v38 }
 0xb4a   :  { %v891_v42 = vsub.f32 %v881_v34, %v889_v40 }
 0xb4b   :  { %v894_v43 = vmul.f32 %v892_v41, %v892_v41 }
 0xb4c   :  { %v893_v44 = vmul.f32 %v891_v42, %v891_v42 }
 0xb4d   :  { %v898_v45 = vsel %vm69_vm0, %v894_v43, 0.0 }
 0xb4e   :  { %899 = vadd.xlane.f32.xlu0 %v898_v45  ;;  %v895_v46 = vsel %vm69_vm0, %v893_v44, 0.0 }
 0xb4f   :  { %896 = vadd.xlane.f32.xlu1 %v895_v46 }
 0xbdb   :  { %v900_v5 = vpop.xlane.xlu0 %899 }
 0xbdc   :  { %v902_v52 = vmul.f32 0.03125, %v900_v5  ;;  %v897_v53 = vpop.xlane.xlu1 %896 }
 0xbdd   :  { %v901_v54 = vmul.f32 0.03125, %v897_v53 }
 0xbde   :  { %v904_v55 = vadd.f32 1e-05, %v902_v52 }
 0xbdf   :  { %v903_v56 = vadd.f32 1e-05, %v901_v54 }
 0xbe0   :  { %2687 = vrsqrt.f32 %v904_v55 }
 0xbe1   :  { %2689 = vrsqrt.f32 %v903_v56 }
 0xbea   :  { %v2688_v57 = vpop.eup %2687 }
 0xbeb   :  { %v2690_v59 = vpop.eup %2689  ;;  %v908_v60 = vmul.f32 %v2688_v57, %v892_v41 }
 0xbec   :  { %v907_v62 = vmul.f32 %v2690_v59, %v891_v42 }
 0xbed   :  { %v916_v0 = vmul.f32 %v2222_v58, %v908_v60 }
 0xbee   :  { %v915_v1 = vmul.f32 %v2222_v58, %v907_v62 }
 0xbef   :  { %v2959_v3 = vadd.f32 %v2223_v63, %v916_v0 }
 0xbf0   :  { %v2957_v2 = vadd.f32 %v2223_v63, %v915_v1 }
 0xbf2   :  { %2420 = vmatprep.mubr.msk.f32.mxu1 %vm69_vm0, %v2957_v2 }
 0xbf3   :  { %2421 = vmatmul.mubr.msk.f32.vlgmr.msra.gmra.mrb[8].mxu1 %vm69_vm0, %v2959_v3 }
 0xcc6   :  { %v2422_v6 = vpop.f32.mrb[8].mxu1 }
 0xcc7   :  { %v1033_v8 = vadd.f32 %v2422_v6, %v2224_v4  ;;  %v1027_v9 = vpop.f32.mrb[9].mxu1 }
 0xcc8   :  { %v1028_v10 = vadd.f32 %v2224_v4, %v1027_v9 }
 0xcca   :  { %2427 = vmatprep.mubr.msk.f32.mxu1 %vm157_vm1, %v1028_v10  ;;  %v2969_v11 = vpack.i.bf16 %v1033_v8, %v1028_v10 }
 0xccc   :  { %2652 = vrot.lane.b32.xlu0 %v2969_v11, %s2779_s16  ;;  %2647 = vrot.lane.b32.xlu1 %v2969_v11, %s2777_s29 }
 0xcd0   :  { %1234 = vrot.lane.b32.xlu1 %v1028_v10, %s2780_s1 }
 0xcd4   :  { %1236 = vrot.lane.b32.xlu1 %v1033_v8, %s2780_s1 }
 0xd3e   :  { %v2653_v12 = vpop.permute.xlu0 %2652  ;;  %v2648_v14 = vpop.permute.xlu1 %2647 }
 0xd3f   :  { %v2655_v15 = vunpack.i.h.bf16 %v2653_v12  ;;  %v2654_v16 = vunpack.i.l.bf16 %v2653_v12  ;;  %v2650_v18 = vunpack.i.h.bf16 %v2648_v14  ;;  %v2649_v21 = vunpack.i.l.bf16 %v2648_v14  ;;  %v929_v14 = vld [vmem:[#allocation2 + $0x28] sm:$0xff] }
 0xd41   :  { %v2548_v22 = vpack.c.bf16 %v2650_v18, %v2649_v21  ;;  %v2558_v23 = vpack.c.bf16 %v2655_v15, %v2654_v16  ;;  %v930_v15 = vld [vmem:[#allocation2 + $0x88] sm:$0xff] }
 0xd42   :  { %v1235_v13 = vpop.permute.xlu1 %1234  ;;  %v2568_v16 = vpack.c.bf16 %v930_v15, %v929_v14  ;;  %v931_v18 = vld [vmem:[#allocation2 + $0xe8] sm:$0xff] }
 0xd43   :  { %2550 = vmatprep.subr.msk.bf16.mxu1 %vm2853_vm2, %v2548_v22  ;;  %v932_v21 = vld [vmem:[#allocation2 + $0x148] sm:$0xff] }
 0xd44   :  { %2553 = vmatpush3.bf16.xpose.msk.msra.mxu1 %vm2853_vm2, %v2548_v22  ;;  %v2572_v22 = vpack.c.bf16 %v932_v21, %v931_v18  ;;  %v2247_v21 = vld [vmem:[%s3084_s4 + $0xd] ss:$0 sm:$0xff] }
 0xd45   :  { %2560 = vmatprep.subr.msk.bf16.mxu1 %vm2853_vm2, %v2558_v23 }
 0xd46   :  { %v1237_v24 = vpop.permute.xlu1 %1236 }
 0xd4b   :  { %2428 = vmatmul.mubr.msk.f32.vlgmr.msra.gmra.mrb[10].mxu1 %vm157_vm1, %v1033_v8 }
 0xd4c   :  { %2563 = vmatpush3.bf16.xpose.msk.msra.mxu1 %vm2853_vm2, %v2558_v23  ;;  %2441 = vmatprep.mubr.msk.f32.mxu1 %vm157_vm1, %v1235_v13 }
 0xd53   :  { %2442 = vmatmul.mubr.msk.f32.vlgmr.msra.gmra.mrb[12].mxu1 %vm157_vm1, %v1237_v24 }
 0xe1e   :  { %v2429_v25 = vpop.f32.mrb[10].mxu1 }
 0xe1f   :  { %v1122_v26 = vadd.f32 %v2429_v25, %v2865_v19  ;;  %v1116_v27 = vpop.f32.mrb[11].mxu1 }
 0xe20   :  { %v1117_v28 = vadd.f32 %v1116_v27, %v2870_v20 }
 0xe21   :  { %v1128_v29 = vsel %vm157_vm1, %v1122_v26, -inf }
 0xe22   :  { %1129 = vmax.xlane.f32.xlu1 %v1128_v29  ;;  %v1125_v30 = vsel %vm157_vm1, %v1117_v28, -inf }
 0xe23   :  { %1126 = vmax.xlane.f32.xlu0 %v1125_v30  ;;  %v2239_v30 = vld [vmem:[%s3084_s4 + $0x9] ss:$0 sm:$0xff] }
 0xe26   :  { %v2443_v31 = vpop.f32.mrb[12].mxu1 }
 0xe27   :  { %v1316_v17 = vpop.f32.mrb[13].mxu1  ;;  %v1322_v33 = vadd.f32 %v2443_v31, %v2865_v19 }
 0xe28   :  { %v1317_v32 = vadd.f32 %v1316_v17, %v2870_v20 }
 0xe29   :  { %v1328_v35 = vsel %vm157_vm1, %v1322_v33, -inf }
 0xe2a   :  { %v1325_v34 = vsel %vm157_vm1, %v1317_v32, -inf }
 0xe2b   :  { %1326 = vmax.xlane.f32.xlu0 %v1325_v34 }
 0xe2f   :  { %1329 = vmax.xlane.f32.xlu0 %v1328_v35 }
 0xeaf   :  { %v1130_v36 = vpop.xlane.xlu1 %1129 }
 0xeb0   :  { %v1132_v37 = vsub.f32 %v1122_v26, %v1130_v36  ;;  %v1127_v38 = vpop.xlane.xlu0 %1126 }
 0xeb1   :  { %v1131_v39 = vsub.f32 %v1117_v28, %v1127_v38 }
 0xeb2   :  { %v1135_v40 = vmul.f32 1.442695, %v1132_v37 }
 0xeb3   :  { %v1133_v41 = vmul.f32 1.442695, %v1131_v39 }
 0xeb4   :  { %2691 = vpow2.f32 %v1135_v40 }
 0xeb5   :  { %2693 = vpow2.f32 %v1133_v41 }
 0xeb8   :  { %v1327_v42 = vpop.xlane.xlu0 %1326 }
 0xeb9   :  { %v1331_v43 = vsub.f32 %v1317_v32, %v1327_v42 }
 0xebb   :  { %v1333_v44 = vmul.f32 1.442695, %v1331_v43 }
 0xebc   :  { %v1330_v20 = vpop.xlane.xlu0 %1329 }
 0xebd   :  { %2695 = vpow2.f32 %v1333_v44  ;;  %v1332_v19 = vsub.f32 %v1322_v33, %v1330_v20 }
 0xebe   :  { %v2692_v45 = vpop.eup %2691 }
 0xebf   :  { %v2694_v46 = vpop.eup %2693  ;;  %v1335_v47 = vmul.f32 1.442695, %v1332_v19  ;;  %v1140_v48 = vsel %vm157_vm1, %v2692_v45, 0.0 }
 0xec0   :  { %1141 = vadd.xlane.f32.xlu0 %v1140_v48  ;;  %v1137_v49 = vsel %vm157_vm1, %v2694_v46, 0.0  ;;  %v936_v48 = vld [vmem:[#allocation2 + $0x150] sm:$0xff] }
 0xec1   :  { %2697 = vpow2.f32 %v1335_v47  ;;  %1138 = vadd.xlane.f32.xlu1 %v1137_v49  ;;  %v935_v47 = vld [vmem:[#allocation2 + $0xf0] sm:$0xff] }
 0xec2   :  { %v2580_v49 = vpack.c.bf16 %v936_v48, %v935_v47  ;;  %v1819_v47 = vld [vmem:[#allocation2 + $0xb8] sm:$0xff] }
 0xec7   :  { %v2696_v50 = vpop.eup %2695 }
 0xec8   :  { %v1337_v51 = vsel %vm157_vm1, %v2696_v50, 0.0 }
 0xec9   :  { %1338 = vadd.xlane.f32.xlu1 %v1337_v51  ;;  %v938_v51 = vld [vmem:[#allocation2 + $0x98] sm:$0xff] }
 0xecb   :  { %v2698_v7 = vpop.eup %2697 }
 0xecc   :  { %v1340_v5 = vsel %vm157_vm1, %v2698_v7, 0.0 }
 0xecd   :  { %1341 = vadd.xlane.f32.xlu0 %v1340_v5 }
 0xeda   :  { %2657 = vrot.lane.b32.xlu1 %v2969_v11, %s2778_s15 }
 0xee3   :  { %2662 = vrot.lane.b32.xlu0 %v2969_v11, %s2781_s17 }
 0xf4d   :  { %v1142_v53 = vpop.xlane.xlu0 %1141 }
 0xf4e   :  { %v1139_v52 = vpop.xlane.xlu1 %1138 }
 0xf4f   :  { %2699 = vrcp.f32 %v1139_v52  ;;  %v940_v52 = vld [vmem:[#allocation2 + $0x158] sm:$0xff] }
 0xf50   :  { %2701 = vrcp.f32 %v1142_v53 }
 0xf56   :  { %v1339_v54 = vpop.xlane.xlu1 %1338 }
 0xf57   :  { %2703 = vrcp.f32 %v1339_v54 }
 0xf59   :  { %v2700_v55 = vpop.eup %2699 }
 0xf5a   :  { %v2658_v56 = vpop.permute.xlu1 %2657  ;;  %v1342_v57 = vpop.xlane.xlu0 %1341  ;;  %v1145_v58 = vmul.f32 %v2700_v55, %v2694_v46 }
 0xf5b   :  { %v2660_v59 = vunpack.i.h.bf16 %v2658_v56  ;;  %v2659_v60 = vunpack.i.l.bf16 %v2658_v56  ;;  %2705 = vrcp.f32 %v1342_v57  ;;  %v2702_v63 = vpop.eup %2701 }
 0xf5c   :  { %2434 = vmatprep.mubr.msk.f32.mxu0 %vm157_vm1, %v1145_v58  ;;  %v1146_v8 = vmul.f32 %v2702_v63, %v2692_v45  ;;  %v934_v45 = vld [vmem:[#allocation2 + $0x90] sm:$0xff] }
 0xf5d   :  { %v2554_v62 = vpack.c.bf16 %v2660_v59, %v2659_v60 }
 0xf5e   :  { %v2663_v0 = vpop.permute.xlu0 %2662 }
 0xf5f   :  { %v2665_v1 = vunpack.i.h.bf16 %v2663_v0  ;;  %v2664_v4 = vunpack.i.l.bf16 %v2663_v0  ;;  %2555 = vmatprep.subr.bf16.mxu0 %v2554_v62  ;;  %v2243_v0 = vld [vmem:[%s3084_s4 + $0xb] ss:$0 sm:$0xff] }
 0xf60   :  { %2557 = vmatpush3.bf16.msra.mxu0 %v2554_v62  ;;  %v2242_v62 = vld [vmem:[%s3084_s4 + $0xa] ss:$0 sm:$0xff] }
 0xf61   :  { %v2704_v6 = vpop.eup %2703  ;;  %v2564_v9 = vpack.c.bf16 %v2665_v1, %v2664_v4 }
 0xf62   :  { %v1345_v10 = vmul.f32 %v2704_v6, %v2696_v50  ;;  %v937_v50 = vld [vmem:[#allocation2 + $0x38] sm:$0xff] }
 0xf63   :  { %2435 = vmatmul.mubr.msk.f32.vlgmr.msra.gmra.mrb[8].mxu0 %vm157_vm1, %v1146_v8  ;;  %2565 = vmatprep.subr.bf16.mxu0 %v2564_v9  ;;  %v2584_v5 = vpack.c.bf16 %v938_v51, %v937_v50 }
 0xf64   :  { %2567 = vmatpush3.bf16.msra.mxu0 %v2564_v9  ;;  %2448 = vmatprep.mubr.msk.f32.mxu0 %vm157_vm1, %v1345_v10  ;;  %v2244_v10 = vld [vmem:[%s3084_s4 + $0xc] ss:$0 sm:$0xff] }
 0xf65   :  { %v2706_v11 = vpop.eup %2705  ;;  %2569 = vmatprep.subr.bf16.mxu0 %v2568_v16 }
 0xf66   :  { %v1346_v12 = vmul.f32 %v2706_v11, %v2698_v7  ;;  %v939_v7 = vld [vmem:[#allocation2 + $0xf8] sm:$0xff] }
 0xf67   :  { %v2590_v53 = vpack.c.bf16 %v940_v52, %v939_v7 }
 0xf68   :  { %2449 = vmatmul.mubr.msk.f32.vlgmr.msra.gmra.mrb[10].mxu0 %vm157_vm1, %v1346_v12 }
 0xf69   :  { %2571 = vmatpush3.bf16.msra.mxu0 %v2568_v16 }
 0xf6a   :  { %2573 = vmatprep.subr.bf16.mxu0 %v2572_v22 }
 0xf6d   :  { %2575 = vmatpush3.bf16.msra.mxu0 %v2572_v22 }
 0xf6e   :  { %2586 = vmatprep.subr.msk.bf16.mxu0 %vm2919_vm4, %v2584_v5 }
0x1036   :  { %v2436_v23 = vpop.f32.mrb[8].mxu0 }
0x1037   :  { %v1225_v13 = vpop.f32.mrb[9].mxu0 }
0x103b   :  { %v2450_v24 = vpop.f32.mrb[10].mxu0 }
0x103c   :  { %v1425_v25 = vpop.f32.mrb[11].mxu0 }
0x103d   :  { %1436 = vrot.lane.b32.xlu1 %v1425_v25, %s2782_s18 }
0x1041   :  { %1438 = vrot.lane.b32.xlu1 %v2450_v24, %s2782_s18 }
0x10af   :  { %v1437_v26 = vpop.permute.xlu1 %1436 }
0x10b0   :  { %v1442_v27 = vsel %vm157_vm1, %v1225_v13, %v1437_v26 }
0x10b1   :  { %2459 = vmatprep.mubr.msk.f32.mxu0 %vm69_vm0, %v1442_v27 }
0x10b3   :  { %v1439_v28 = vpop.permute.xlu1 %1438 }
0x10b4   :  { %v1443_v29 = vsel %vm157_vm1, %v2436_v23, %v1439_v28 }
0x10b5   :  { %2460 = vmatmul.mubr.msk.f32.vlgmr.msra.gmra.mrb[12].mxu0 %vm69_vm0, %v1443_v29 }
0x10b6   :  { %2589 = vmatpush3.bf16.xpose.msk.msra.mxu0 %vm2919_vm4, %v2584_v5 }
0x10b7   :  { %2592 = vmatprep.subr.msk.bf16.mxu0 %vm2919_vm4, %v2590_v53 }
0x10be   :  { %2595 = vmatpush3.bf16.xpose.msk.msra.mxu0 %vm2919_vm4, %v2590_v53 }
0x1188   :  { %v2461_v31 = vpop.f32.mrb[12].mxu0 }
0x1189   :  { %v1528_v17 = vadd.f32 %v2461_v31, %v2239_v30  ;;  %v1522_v32 = vpop.f32.mrb[13].mxu0 }
0x118a   :  { %v1523_v33 = vadd.f32 %v2239_v30, %v1522_v32 }
0x118b   :  { %v1532_v34 = vadd.f32 %v1528_v17, %v2959_v3 }
0x118c   :  { %v1531_v35 = vadd.f32 %v1523_v33, %v2957_v2  ;;  %v933_v2 = vld [vmem:[#allocation2 + $0x30] sm:$0xff] }
0x118d   :  { %v1536_v36 = vsel %vm69_vm0, %v1532_v34, 0.0  ;;  %v2576_v46 = vpack.c.bf16 %v934_v45, %v933_v2  ;;  %v1824_v2 = vld [vmem:[#allocation2 + $0x160] sm:$0xff]  ;;  %v2783_v45 = vmov 0.0  }
0x118e   :  { %1537 = vadd.xlane.f32.xlu1 %v1536_v36  ;;  %v1533_v37 = vsel %vm69_vm0, %v1531_v35, 0.0 }
0x118f   :  { %1534 = vadd.xlane.f32.xlu0 %v1533_v37  ;;  %2577 = vmatprep.subr.bf16.mxu1 %v2576_v46 }
0x1190   :  { %2579 = vmatpush3.bf16.msra.mxu1 %v2576_v46  ;;  %v1815_v46 = vld [vmem:[#allocation2 + $0x58] sm:$0xff] }
0x1191   :  { %2581 = vmatprep.subr.bf16.mxu1 %v2580_v49 }
0x1194   :  { %2583 = vmatpush3.bf16.msra.mxu1 %v2580_v49  ;;  %v2604_v49 = vpack.c.bf16 %v1819_v47, %v1815_v46  ;;  %v2258_v46 = vld [vmem:[%s3084_s4 + $0x14] ss:$0 sm:$0xff] }
0x121b   :  { %v1538_v38 = vpop.xlane.xlu1 %1537 }
0x121c   :  { %v1540_v39 = vmul.f32 0.03125, %v1538_v38  ;;  %v1535_v40 = vpop.xlane.xlu0 %1534  ;;  %v1813_v38 = vld [vmem:[#allocation2 + $0x48] sm:$0xff] }
0x121d   :  { %v1539_v41 = vmul.f32 0.03125, %v1535_v40 }
0x121e   :  { %v1542_v42 = vsub.f32 %v1532_v34, %v1540_v39  ;;  %v1817_v39 = vld [vmem:[#allocation2 + $0xa8] sm:$0xff] }
0x121f   :  { %v1541_v43 = vsub.f32 %v1531_v35, %v1539_v41  ;;  %v2596_v40 = vpack.c.bf16 %v1817_v39, %v1813_v38  ;;  %v1812_v41 = vld [vmem:[#allocation2 + $0x40] sm:$0xff] }
0x1220   :  { %v1544_v19 = vmul.f32 %v1542_v42, %v1542_v42 }
0x1221   :  { %v1543_v44 = vmul.f32 %v1541_v43, %v1541_v43  ;;  %2597 = vmatprep.subr.bf16.mxu1 %v2596_v40 }
0x1222   :  { %v1548_v3 = vsel %vm69_vm0, %v1544_v19, 0.0  ;;  %v1820_v19 = vld [vmem:[#allocation2 + $0x100] sm:$0xff] }
0x1223   :  { %v1545_v20 = vsel %vm69_vm0, %v1543_v44, 0.0  ;;  %v1821_v44 = vld [vmem:[#allocation2 + $0x108] sm:$0xff]  ;;  %v2602_v48 = vpack.c.bf16 %v1824_v2, %v1820_v19 }
0x1224   :  { %1546 = vadd.xlane.f32.xlu0 %v1545_v20  ;;  %v1825_v20 = vld [vmem:[#allocation2 + $0x168] sm:$0xff] }
0x1228   :  { %1549 = vadd.xlane.f32.xlu0 %v1548_v3  ;;  %v2600_v3 = vpack.c.bf16 %v1825_v20, %v1821_v44 }
0x12b1   :  { %v1547_v54 = vpop.xlane.xlu0 %1546 }
0x12b2   :  { %v1551_v55 = vmul.f32 0.03125, %v1547_v54 }
0x12b4   :  { %v1553_v56 = vadd.f32 1e-05, %v1551_v55  ;;  %v2254_v55 = vld [vmem:[%s3084_s4 + $0xe] ss:$0 sm:$0xff] }
0x12b5   :  { %v1550_v57 = vpop.xlane.xlu0 %1549 }
0x12b6   :  { %2707 = vrsqrt.f32 %v1553_v56  ;;  %v1552_v58 = vmul.f32 0.03125, %v1550_v57 }
0x12b8   :  { %v1554_v59 = vadd.f32 1e-05, %v1552_v58 }
0x12ba   :  { %2709 = vrsqrt.f32 %v1554_v59  ;;  %v2255_v59 = vld [vmem:[%s3084_s4 + $0xf] ss:$0 sm:$0xff] }
0x12c0   :  { %v2708_v60 = vpop.eup %2707 }
0x12c1   :  { %v1557_v63 = vmul.f32 %v2708_v60, %v1541_v43 }
0x12c3   :  { %v1565_v61 = vmul.f32 %v2242_v62, %v1557_v63  ;;  %v1814_v63 = vld [vmem:[#allocation2 + $0x50] sm:$0xff] }
0x12c4   :  { %v2710_v1 = vpop.eup %2709 }
0x12c5   :  { %v1558_v4 = vmul.f32 %v2710_v1, %v1542_v42  ;;  %v1573_v6 = vadd.f32 %v2243_v0, %v1565_v61  ;;  %v1816_v42 = vld [vmem:[#allocation2 + $0xa0] sm:$0xff]  ;;  %v1823_v1 = vld [vmem:[#allocation2 + $0x118] sm:$0xff] }
0x12c6   :  { %v2598_v43 = vpack.c.bf16 %v1816_v42, %v1812_v41 }
0x12c7   :  { %v1566_v8 = vmul.f32 %v2242_v62, %v1558_v4  ;;  %2470 = vmatprep.mubr.msk.f32.mxu1 %vm69_vm0, %v1573_v6  ;;  %v1827_v4 = vld [vmem:[#allocation2 + $0x178] sm:$0xff] }
0x12c9   :  { %v1574_v9 = vadd.f32 %v2243_v0, %v1566_v8  ;;  %v1818_v0 = vld [vmem:[#allocation2 + $0xb0] sm:$0xff] }
0x12cb   :  { %2471 = vmatmul.mubr.msk.f32.vlgmr.msra.gmra.mrb[14].mxu1 %vm69_vm0, %v1574_v9 }
0x12cc   :  { %2599 = vmatpush1.bf16.msra.mxu1 %v2598_v43  ;;  %1918 = vmatprep.mubr.f32.mxu1 %v2783_v45 }
0x12cd   :  { %2601 = vmatprep.subr.bf16.mxu1 %v2600_v3 }
0x12d0   :  { %2603 = vmatpush1.bf16.msra.mxu1 %v2602_v48 }
0x12d1   :  { %2605 = vmatprep.subr.bf16.mxu1 %v2604_v49 }
0x139e   :  { %v2472_v11 = vpop.f32.mrb[14].mxu1 }
0x139f   :  { %v1659_v12 = vadd.f32 %v2472_v11, %v2244_v10  ;;  %v1653_v14 = vpop.f32.mrb[15].mxu1  ;;  %v1822_v11 = vld [vmem:[#allocation2 + $0x110] sm:$0xff] }
0x13a0   :  { %v1654_v15 = vadd.f32 %v2244_v10, %v1653_v14  ;;  %v2608_v10 = vpack.c.bf16 %v1827_v4, %v1823_v1 }
0x13a1   :  { %v1663_v18 = vmax.f32 %v1659_v12, 0.0  ;;  %v1826_v12 = vld [vmem:[#allocation2 + $0x170] sm:$0xff] }
0x13a2   :  { %v1662_v16 = vmax.f32 %v1654_v15, 0.0  ;;  %v2610_v15 = vpack.c.bf16 %v1826_v12, %v1822_v11 }
0x13a4   :  { %2481 = vmatprep.mubr.msk.f32.mxu0 %vm787_vm3, %v1662_v16  ;;  %v1831_v16 = vlaneseq }
0x13a5   :  { %2482 = vmatmul.mubr.msk.f32.vlgmr.msra.gmra.mrb[14].mxu0 %vm787_vm3, %v1663_v18  ;;  %v2784_v18 = vmov 1983009808  }
0x1478   :  { %v2483_v22 = vpop.f32.mrb[14].mxu0 }
0x1479   :  { %v1760_v23 = vadd.f32 %v2483_v22, %v2247_v21  ;;  %v1754_v13 = vpop.f32.mrb[15].mxu0  ;;  %v1832_v22 = vshrl.u32 %v1831_v16, 7 }
0x147a   :  { %v1755_v24 = vadd.f32 %v2247_v21, %v1754_v13  ;;  %v2010_v21 = vunpack.c.l.s4 %v2784_v18 }
0x147b   :  { %v1764_v25 = vadd.f32 %v1760_v23, %v1574_v9  ;;  %v2606_v9 = vpack.c.bf16 %v1818_v0, %v1814_v63  ;;  %v1845_v39 = vsub.s32 3, %v1832_v22 }
0x147c   :  { %v1763_v26 = vadd.f32 %v1755_v24, %v1573_v6  ;;  %v2011_v23 = vunpack.c.0.s8 %v2010_v21  ;;  %v2000_v24 = vld [vmem:[%s3083_s3] sm:$0xff] }
0x147d   :  { %v1768_v27 = vsel %vm69_vm0, %v1764_v25, 0.0 }
0x147e   :  { %1769 = vadd.xlane.f32.xlu1 %v1768_v27  ;;  %v1765_v28 = vsel %vm69_vm0, %v1763_v26, 0.0  ;;  %v2014_v13 = vsub.s32 %v2011_v23, %v1832_v22  ;;  %v2008_v27 = vcombine.high %v2000_v24, %v2000_v24 }
0x147f   :  { %1766 = vadd.xlane.f32.xlu0 %v1765_v28 }
0x1480   :  { %v2022_v28 = vrot.slane %v2008_v27, %v2014_v13 }
0x150b   :  { %v1770_v29 = vpop.xlane.xlu1 %1769 }
0x150c   :  { %v1772_v30 = vmul.f32 0.03125, %v1770_v29  ;;  %v1767_v31 = vpop.xlane.xlu0 %1766  ;;  %v2024_v29 = vcombine.high %v2022_v28, %v2022_v28 }
0x150d   :  { %v1771_v17 = vmul.f32 0.03125, %v1767_v31  ;;  %v1828_v31 = vld [vmem:[%s3084_s4 + $0x10] sm:$0xf] }
0x150e   :  { %v1774_v32 = vsub.f32 %v1764_v25, %v1772_v30  ;;  %v2015_v25 = vrot.slane %v2000_v24, %v2014_v13  ;;  %v1833_v30 = vsub.s32 0, %v1832_v22  ;;  %v1846_v41 = vrot.slane %v1828_v31, %v1845_v39 }
0x150f   :  { %v1773_v33 = vsub.f32 %v1763_v26, %v1771_v17  ;;  %v1837_v17 = vsub.s32 1, %v1832_v22 }
0x1510   :  { %v1776_v34 = vmul.f32 %v1774_v32, %v1774_v32  ;;  %v2023_v26 = vcombine.high %v2015_v25, %v2015_v25 }
0x1511   :  { %v1775_v35 = vmul.f32 %v1773_v33, %v1773_v33 }
0x1512   :  { %v1780_v36 = vsel %vm69_vm0, %v1776_v34, 0.0  ;;  %2029 = vmatprep.subr.mxu0 %v2023_v26 }
0x1513   :  { %1781 = vadd.xlane.f32.xlu1 %v1780_v36  ;;  %v1777_v37 = vsel %vm69_vm0, %v1775_v35, 0.0  ;;  %2030 = vmatpush1.xpose.msra.mxu0 %v2015_v25 }
0x1514   :  { %1778 = vadd.xlane.f32.xlu0 %v1777_v37  ;;  %2099 = vmatprep.subr.mxu0 %v2024_v29  ;;  %v1841_v37 = vsub.s32 2, %v1832_v22 }
0x1516   :  { %v1842_v40 = vrot.slane %v1828_v31, %v1841_v37 }
0x15a0   :  { %v1782_v50 = vpop.xlane.xlu1 %1781 }
0x15a1   :  { %v1784_v51 = vmul.f32 0.03125, %v1782_v50  ;;  %v1779_v7 = vpop.xlane.xlu0 %1778 }
0x15a2   :  { %v1783_v5 = vmul.f32 0.03125, %v1779_v7 }
0x15a3   :  { %v1786_v52 = vadd.f32 1e-05, %v1784_v51 }
0x15a4   :  { %v1785_v53 = vadd.f32 1e-05, %v1783_v5 }
0x15a5   :  { %2711 = vrsqrt.f32 %v1786_v52 }
0x15a6   :  { %2713 = vrsqrt.f32 %v1785_v53 }
0x15af   :  { %v2712_v54 = vpop.eup %2711 }
0x15b0   :  { %v2714_v56 = vpop.eup %2713  ;;  %v1790_v57 = vmul.f32 %v2712_v54, %v1774_v32  ;;  %v1834_v32 = vrot.slane %v1828_v31, %v1833_v30 }
0x15b1   :  { %v1789_v58 = vmul.f32 %v2714_v56, %v1773_v33  ;;  %v1838_v33 = vrot.slane %v1828_v31, %v1837_v17 }
0x15b2   :  { %v1798_v60 = vmul.f32 %v2254_v55, %v1790_v57 }
0x15b3   :  { %v1797_v62 = vmul.f32 %v2254_v55, %v1789_v58 }
0x15b4   :  { %v1806_v61 = vadd.f32 %v2255_v59, %v1798_v60 }
0x15b5   :  { %v1805_v6 = vadd.f32 %v2255_v59, %v1797_v62 }
0x15b6   :  { %v1808_v8 = vrot.slane %v1806_v61, 7 }
0x15b8   :  { %v1811_v14 = vsel %vm1810_vm5, %v1805_v6, %v1808_v8 }
0x15b9   :  { %2256 = vmatmul.mubr.msk.f32.vlgmr.msra.gmra.mrb[16].mxu1 %vm69_vm0, %v1811_v14 }
0x15ba   :  { %2607 = vmatpush1.bf16.msra.mxu1 %v2606_v9  ;;  %1989 = vmatprep.mubr.f32.mxu1 %v2783_v45 }
0x15bb   :  { %2609 = vmatprep.subr.bf16.mxu1 %v2608_v10 }
0x15be   :  { %2611 = vmatpush1.bf16.msra.mxu1 %v2610_v15 }
0x15c1   :  { %2257 = vmatmul.mubr.msk.f32.vlgmr.msra.gmra.mrb[18].mxu1 %vm69_vm0, %v1811_v14 }
0x168c   :  { %v1920_v34 = vpop.f32.mrb[16].mxu1 }
0x168d   :  { %v1921_v35 = vadd.f32 %v1920_v34, %v1834_v32  ;;  %v1922_v36 = vpop.f32.mrb[17].mxu1 }
0x168e   :  { %v1923_v38 = vadd.f32 %v1922_v36, %v1838_v33 }
0x1690   :  { %2715 = vtanh.f32 %v1923_v38 }
0x1691   :  { %2717 = vtanh.f32 %v1921_v35 }
0x1694   :  { %v1991_v42 = vpop.f32.mrb[18].mxu1 }
0x1695   :  { %v1992_v43 = vadd.f32 %v1991_v42, %v1842_v40  ;;  %v1993_v44 = vpop.f32.mrb[19].mxu1 }
0x1696   :  { %v1994_v20 = vadd.f32 %v1993_v44, %v1846_v41 }
0x1698   :  { %2719 = vtanh.f32 %v1994_v20 }
0x1699   :  { %2721 = vtanh.f32 %v1992_v43 }
0x169a   :  { %v2716_v19 = vpop.eup %2715 }
0x169b   :  { %v2718_v3 = vpop.eup %2717  ;;  %2093 = vmatprep.mubr.f32.mxu0 %v2716_v19 }
0x169c   :  { %2094 = vmatmul.mubr.f32.vlgmr.msra.gmra.mrb[16].mxu0 %v2718_v3 }
0x169d   :  { %2100 = vmatpush1.xpose.msra.mxu0 %v2022_v28 }
0x16a2   :  { %v2720_v2 = vpop.eup %2719 }
0x16a3   :  { %v2722_v45 = vpop.eup %2721  ;;  %2163 = vmatprep.mubr.f32.mxu0 %v2720_v2 }
0x16a4   :  { %2164 = vmatmul.mubr.f32.vlgmr.msra.gmra.mrb[16].mxu0 %v2722_v45 }
0x1777   :  { %v2165_v47 = vpop.f32.mrb[16].mxu0 }
0x1778   :  { %v2612_v48 = vadd.f32 %v2258_v46, %v2165_v47  ;;  %v2167_v49 = vpop.f32.mrb[17].mxu0 }
0x177a   :  { %v2259_v50 = vmul.f32 -1.442695, %v2612_v48 }
0x177c   :  { %2723 = vpow2.f32 %v2259_v50 }
0x1786   :  { %v2724_v51 = vpop.eup %2723 }
0x1787   :  { %v2172_v7 = vadd.f32 1.0, %v2724_v51 }
0x1789   :  { %2725 = vrcp.f32 %v2172_v7 }
0x1793   :  { %v2726_v5 = vpop.eup %2725 }
0x1794   :  { %2176 = vst.msk [vmem:[#allocation5] sm:$0x3] %vm2175_vm6, %v2726_v5 }
0x1795   :  { %2760 = shalt.err (!%p2757_p12)
}
0x1796   :  { %s2761_s6 = scalar_lea.hbm %s3085_s5, 32 }
0x1797   :  { %p2762_p13 = scmp.ne.s32.totalorder %s3085_s5, %s2761_s6  ;;  %p2765_p0 = scmp.lt.u32.totalorder %s2761_s6, %s3085_s5 }
0x1799   :  { %p2767_p1 = pnand %p2765_p0, %p2762_p13 }
0x179b   :  { %2770 = shalt.err (!%p2767_p1)
}
0x179c   :  { %2186 = dma.vmem_to_hbm [thread:$0]  %s2184_s27, 32, %s3085_s5, [#allocation4]  }
0x179d   :  { %2773 = dma.done.wait [#allocation4], 32  }
0x179e   :  { %2774 = vsyncadd [#allocation4], 4294967264 }
0x179f   :  { %2190 = vsyncpa [#allocation3], 1 }
0x17a0   :  { %2191 = vsyncpa [#allocation4], 1 }

</bundles_post_ra>
